<compile_context>
chip_gen: v6e
topology: v6e:2x2x1
jax: 0.10.0
libtpu: 0.0.40
codegen_flags: <defaults>
</compile_context>

<pallas_src>
import jax
import jax.numpy as jnp
from jax import lax
from jax.experimental import pallas as pl
from jax.experimental.pallas import tpu as pltpu


# ----------------------------------------------------------------------------
# Fused kernel: 3 bottlenecks, all math in (C, H*W) lane-dense layout.
# ----------------------------------------------------------------------------
def _make_kernel(Cin, Cout, Cmid, H, W, pad_l):
    HW = H * W

    def kernel(alpha_ref, x_ref, wp_ref, bp_ref, *rest):
        # rest = 3 blocks x (w1,b1,w2,b2,w3,b3)  +  out_ref  +  pad scratch
        blocks = [rest[6 * i:6 * i + 6] for i in range(3)]
        o_ref = rest[18]
        pad_ref = rest[19]

        # Zero the padded staging buffer once; only its center is ever written,
        # so the zero border provides the 3x3 conv's (pad=1) rows for free.
        pad_ref[...] = jnp.zeros_like(pad_ref)

        # 0/1 masks (f32) for the horizontal taps of the 3x3 conv
        # (the vertical taps are handled by the zero border above).
        col = lax.broadcasted_iota(jnp.int32, (1, HW), 1) % W
        mask_l = (col >= 1).astype(jnp.float32)        # tap dw = -1 valid
        mask_r = (col <= W - 2).astype(jnp.float32)    # tap dw = +1 valid

        def conv1x1(xin, w_ref, b_ref, relu):
            # (Co, Ci) @ (Ci, HW) -> (Co, HW): single MXU matmul, lane-dense N.
            y = jnp.dot(w_ref[...], xin, preferred_element_type=jnp.float32)
            y = y + b_ref[...]
            return jnp.maximum(y, 0.0) if relu else y

        def conv3x3_relu(xin, w_ref, b_ref):
            # xin: (Cmid, HW).  Stage into the row-padded flat buffer so every
            # of the 9 taps is a static lane-slice, then build the im2col
            # matrix (9*Cmid, HW) and do ONE MXU matmul with K = 9*Cmid.
            pad_ref[:, pl.ds(pad_l, HW)] = xin          # 128-aligned store
            pieces = []
            for dh in (-1, 0, 1):
                for dw in (-1, 0, 1):
                    off = pad_l + dh * W + dw
                    patch = pad_ref[:, pl.ds(off, HW)]
                    if dw == -1:
                        patch = patch * mask_l
                    elif dw == 1:
                        patch = patch * mask_r
                    pieces.append(patch)
            patches = jnp.concatenate(pieces, axis=0)                # (9*Cmid, HW)
            y = jnp.dot(w_ref[...], patches,
                        preferred_element_type=jnp.float32)          # (Cmid, HW)
            return jnp.maximum(y + b_ref[...], 0.0)

        def bottleneck(xin, shortcut, blk, alpha):
            w1, b1, w2, b2, w3, b3 = blk
            h = conv1x1(xin, w1, b1, relu=True)
            h = conv3x3_relu(h, w2, b2)
            h = conv1x1(h, w3, b3, relu=False)
            return shortcut + alpha * h

        x = x_ref[...]                                               # (Cin, HW)

        # block 0: Cin -> Cout, 1x1 projection shortcut (channel change)
        sc0 = conv1x1(x, wp_ref, bp_ref, relu=False)
        y = bottleneck(x, sc0, blocks[0], alpha_ref[0])
        # blocks 1, 2: Cout -> Cout, identity shortcut
        y = bottleneck(y, y, blocks[1], alpha_ref[1])
        y = bottleneck(y, y, blocks[2], alpha_ref[2])

        o_ref[...] = y.astype(o_ref.dtype)

    return kernel


# ----------------------------------------------------------------------------
# Wrapper: layout plumbing only (free reshapes / one-time weight repacking).
# ----------------------------------------------------------------------------
def stacked_resnext_block_forward(x_nchw, params, alphas):
    N, Cin, H, W = x_nchw.shape
    Cmid = params["b0"]["w1"].shape[3]
    Cout = params["b0"]["w3"].shape[3]
    HW = H * W
    PAD_L = 128                       # lane-aligned left pad of the staging slab
    PAD_W = PAD_L + HW + PAD_L

    x_flat = x_nchw.reshape(N, Cin, HW)                 # NCHW -> (N, C, H*W), free
    alphas = jnp.asarray(alphas, jnp.float32).reshape(3)

    def w1x1(w):                      # (1,1,ci,co) -> (co, ci)
        return jnp.transpose(w[0, 0], (1, 0))

    def w3x3(w):                      # (3,3,ci,co) -> (co, 9*ci), tap-major rows
        return jnp.transpose(w, (3, 0, 1, 2)).reshape(w.shape[3], -1)

    def bcol(b):                      # (co,) -> (co, 1)
        return b.reshape(-1, 1)

    args = [alphas, x_flat, w1x1(params["proj_w"]), bcol(params["proj_b"])]
    for i in range(3):
        p = params[f"b{i}"]
        args += [w1x1(p["w1"]), bcol(p["b1"]), w3x3(p["w2"]), bcol(p["b2"]),
                 w1x1(p["w3"]), bcol(p["b3"])]

    in_specs = [pl.BlockSpec(memory_space=pltpu.MemorySpace.SMEM),    # alphas
                pl.BlockSpec((None, Cin, HW), lambda n: (n, 0, 0))]   # x
    in_specs += [pl.BlockSpec(a.shape, lambda n: (0, 0)) for a in args[2:]]

    out = pl.pallas_call(
        _make_kernel(Cin, Cout, Cmid, H, W, PAD_L),
        out_shape=jax.ShapeDtypeStruct((N, Cout, HW), x_nchw.dtype),
        grid=(N,),
        in_specs=in_specs,
        out_specs=pl.BlockSpec((None, Cout, HW), lambda n: (n, 0, 0)),
        scratch_shapes=[pltpu.VMEM((Cmid, PAD_W), jnp.float32)],
        compiler_params=pltpu.CompilerParams(
            dimension_semantics=("parallel",)),
    )(*args)
    return out.reshape(N, Cout, H, W)                   # (N, C, H*W) -> NCHW, free


# ----------------------------------------------------------------------------
# Pure-JAX reference (same assumed architecture) for numerical validation.
# ----------------------------------------------------------------------------
def _conv_ref(x, w, b, padding):
    y = lax.conv_general_dilated(
        x, w, window_strides=(1, 1),
        padding=[(padding, padding), (padding, padding)],
        dimension_numbers=("NHWC", "HWIO", "NHWC"),
        precision=lax.Precision.HIGHEST)
    return y + b.reshape(1, 1, 1, -1)


def reference_forward(x_nchw, params, alphas):
    y = jnp.transpose(x_nchw, (0, 2, 3, 1))             # NCHW -> NHWC
    for i in range(3):
        p = params[f"b{i}"]
        h = jnp.maximum(_conv_ref(y, p["w1"], p["b1"], 0), 0.0)
        h = jnp.maximum(_conv_ref(h, p["w2"], p["b2"], 1), 0.0)
        h = _conv_ref(h, p["w3"], p["b3"], 0)
        sc = _conv_ref(y, params["proj_w"], params["proj_b"], 0) if i == 0 else y
        y = sc + alphas[i] * h
    return jnp.transpose(y, (0, 3, 1, 2))               # NHWC -> NCHW


# ----------------------------------------------------------------------------
# Deterministic parameter init (weights kept in HWIO; repacked in the wrapper)
# ----------------------------------------------------------------------------
def init_params(key, in_channel, out_channel):
    mid = max(out_channel // 2, 1)

    def conv_init(key, kh, kw, cin, cout):
        kw_, kb_ = jax.random.split(key)
        w = 0.1 * jax.random.normal(kw_, (kh, kw, cin, cout), jnp.float32)
        b = 0.01 * jax.random.normal(kb_, (cout,), jnp.float32)
        return w, b

    keys = jax.random.split(key, 4)
    params = {}
    params["proj_w"], params["proj_b"] = conv_init(keys[0], 1, 1, in_channel, out_channel)
    cin = in_channel
    for i in range(3):
        k1, k2, k3 = jax.random.split(keys[1 + i], 3)
        w1, b1 = conv_init(k1, 1, 1, cin, mid)
        w2, b2 = conv_init(k2, 3, 3, mid, mid)
        w3, b3 = conv_init(k3, 1, 1, mid, out_channel)
        params[f"b{i}"] = dict(w1=w1, b1=b1, w2=w2, b2=b2, w3=w3, b3=b3)
        cin = out_channel
    return params


if __name__ == "__main__":
    # NCHW input, in_channel=4, out_channel=8, rezero=False (alpha fixed at 1.0)
    N, IN_C, OUT_C, H, W = 2, 4, 8, 16, 16
    REZERO = False
    alphas = jnp.asarray([0.0 if REZERO else 1.0] * 3, jnp.float32)

    key = jax.random.PRNGKey(0)
    k_x, k_p = jax.random.split(key)
    x = jax.random.normal(k_x, (N, IN_C, H, W), jnp.float32)
    params = init_params(k_p, IN_C, OUT_C)

    fwd = jax.jit(stacked_resnext_block_forward)
    out = jax.block_until_ready(fwd(x, params, alphas))

    assert out.shape == (N, OUT_C, H, W), out.shape
    assert bool(jnp.all(jnp.isfinite(out)))

    ref = jax.block_until_ready(reference_forward(x, params, alphas))
    max_err = float(jnp.max(jnp.abs(out - ref)))
    assert jnp.allclose(out, ref, atol=3e-2, rtol=3e-2), f"max abs err {max_err}"

    print("KERNEL_OK")
</pallas_src>

<mosaic_0001>
module attributes {stable_mosaic.version = 11 : i64} {
  func.func @kernel(%arg0: i32, %arg1: memref<3xf32, #tpu.memory_space<smem>>, %arg2: memref<1x4x256xf32, #tpu.memory_space<vmem>>, %arg3: memref<8x4xf32, #tpu.memory_space<vmem>>, %arg4: memref<8x1xf32, #tpu.memory_space<vmem>>, %arg5: memref<4x4xf32, #tpu.memory_space<vmem>>, %arg6: memref<4x1xf32, #tpu.memory_space<vmem>>, %arg7: memref<4x36xf32, #tpu.memory_space<vmem>>, %arg8: memref<4x1xf32, #tpu.memory_space<vmem>>, %arg9: memref<8x4xf32, #tpu.memory_space<vmem>>, %arg10: memref<8x1xf32, #tpu.memory_space<vmem>>, %arg11: memref<4x8xf32, #tpu.memory_space<vmem>>, %arg12: memref<4x1xf32, #tpu.memory_space<vmem>>, %arg13: memref<4x36xf32, #tpu.memory_space<vmem>>, %arg14: memref<4x1xf32, #tpu.memory_space<vmem>>, %arg15: memref<8x4xf32, #tpu.memory_space<vmem>>, %arg16: memref<8x1xf32, #tpu.memory_space<vmem>>, %arg17: memref<4x8xf32, #tpu.memory_space<vmem>>, %arg18: memref<4x1xf32, #tpu.memory_space<vmem>>, %arg19: memref<4x36xf32, #tpu.memory_space<vmem>>, %arg20: memref<4x1xf32, #tpu.memory_space<vmem>>, %arg21: memref<8x4xf32, #tpu.memory_space<vmem>>, %arg22: memref<8x1xf32, #tpu.memory_space<vmem>>, %arg23: memref<1x8x256xf32, #tpu.memory_space<vmem>>, %arg24: memref<4x512xf32, #tpu.memory_space<vmem>>) attributes {dimension_semantics = [#tpu.dimension_semantics<parallel>], iteration_bounds = array<i64: 2>, scalar_prefetch = 0 : i64, scratch_operands = 1 : i64, tpu.core_type = #tpu.core_type<tc>, window_params = [{transform_indices = @transform_0, window_bounds = array<i64: 3>}, {transform_indices = @transform_1, window_bounds = array<i64: 1, 4, 256>}, {pipeline_mode = #tpu.pipeline_mode<synchronous>, transform_indices = @transform_2, window_bounds = array<i64: 8, 4>}, {pipeline_mode = #tpu.pipeline_mode<synchronous>, transform_indices = @transform_3, window_bounds = array<i64: 8, 1>}, {pipeline_mode = #tpu.pipeline_mode<synchronous>, transform_indices = @transform_4, window_bounds = array<i64: 4, 4>}, {pipeline_mode = #tpu.pipeline_mode<synchronous>, transform_indices = @transform_5, window_bounds = array<i64: 4, 1>}, {pipeline_mode = #tpu.pipeline_mode<synchronous>, transform_indices = @transform_6, window_bounds = array<i64: 4, 36>}, {pipeline_mode = #tpu.pipeline_mode<synchronous>, transform_indices = @transform_7, window_bounds = array<i64: 4, 1>}, {pipeline_mode = #tpu.pipeline_mode<synchronous>, transform_indices = @transform_8, window_bounds = array<i64: 8, 4>}, {pipeline_mode = #tpu.pipeline_mode<synchronous>, transform_indices = @transform_9, window_bounds = array<i64: 8, 1>}, {pipeline_mode = #tpu.pipeline_mode<synchronous>, transform_indices = @transform_10, window_bounds = array<i64: 4, 8>}, {pipeline_mode = #tpu.pipeline_mode<synchronous>, transform_indices = @transform_11, window_bounds = array<i64: 4, 1>}, {pipeline_mode = #tpu.pipeline_mode<synchronous>, transform_indices = @transform_12, window_bounds = array<i64: 4, 36>}, {pipeline_mode = #tpu.pipeline_mode<synchronous>, transform_indices = @transform_13, window_bounds = array<i64: 4, 1>}, {pipeline_mode = #tpu.pipeline_mode<synchronous>, transform_indices = @transform_14, window_bounds = array<i64: 8, 4>}, {pipeline_mode = #tpu.pipeline_mode<synchronous>, transform_indices = @transform_15, window_bounds = array<i64: 8, 1>}, {pipeline_mode = #tpu.pipeline_mode<synchronous>, transform_indices = @transform_16, window_bounds = array<i64: 4, 8>}, {pipeline_mode = #tpu.pipeline_mode<synchronous>, transform_indices = @transform_17, window_bounds = array<i64: 4, 1>}, {pipeline_mode = #tpu.pipeline_mode<synchronous>, transform_indices = @transform_18, window_bounds = array<i64: 4, 36>}, {pipeline_mode = #tpu.pipeline_mode<synchronous>, transform_indices = @transform_19, window_bounds = array<i64: 4, 1>}, {pipeline_mode = #tpu.pipeline_mode<synchronous>, transform_indices = @transform_20, window_bounds = array<i64: 8, 4>}, {pipeline_mode = #tpu.pipeline_mode<synchronous>, transform_indices = @transform_21, window_bounds = array<i64: 8, 1>}, {transform_indices = @transform_22, window_bounds = array<i64: 1, 8, 256>}]} {
    %cst = arith.constant 0.000000e+00 : f32
    %0 = vector.broadcast %cst : f32 to vector<4x512xf32>
    %c0 = arith.constant 0 : index
    %c0_0 = arith.constant 0 : index
    %1 = vector.load %arg24[%c0, %c0_0] : memref<4x512xf32, #tpu.memory_space<vmem>>, vector<4x512xf32>
    tpu.vector_store %arg24[%c0, %c0_0], %0 {strides = array<i32>} : memref<4x512xf32, #tpu.memory_space<vmem>>, vector<4x512xf32>,
    %2 = tpu.iota {dimensions = array<i32: 1>} : vector<1x256xi32>
    %c16_i32 = arith.constant 16 : i32
    %c0_i32 = arith.constant 0 : i32
    %3 = arith.cmpi eq, %c16_i32, %c0_i32 : i32
    %c1_i32 = arith.constant 1 : i32
    %4 = arith.select %3, %c1_i32, %c16_i32 : i32
    %5 = vector.broadcast %4 : i32 to vector<1x256xi32>
    %6 = arith.remsi %2, %5 : vector<1x256xi32>
    %c0_i32_1 = arith.constant 0 : i32
    %7 = vector.broadcast %c0_i32_1 : i32 to vector<1x256xi32>
    %8 = arith.cmpi ne, %6, %7 : vector<1x256xi32>
    %c0_i32_2 = arith.constant 0 : i32
    %9 = vector.broadcast %c0_i32_2 : i32 to vector<1x256xi32>
    %10 = arith.cmpi slt, %6, %9 : vector<1x256xi32>
    %c0_i32_3 = arith.constant 0 : i32
    %11 = arith.cmpi slt, %4, %c0_i32_3 : i32
    %12 = vector.broadcast %11 : i1 to vector<1x256xi1>
    %13 = vector.broadcast %12 : vector<1x256xi1> to vector<1x256xi1>
    %14 = arith.xori %10, %13 : vector<1x256xi1>
    %15 = arith.andi %14, %8 : vector<1x256xi1>
    %16 = vector.broadcast %4 : i32 to vector<1x256xi32>
    %17 = arith.addi %6, %16 : vector<1x256xi32>
    %18 = arith.select %15, %17, %6 : vector<1x256xi1>, vector<1x256xi32>
    %c1_i32_4 = arith.constant 1 : i32
    %19 = vector.broadcast %c1_i32_4 : i32 to vector<1x256xi32>
    %20 = arith.cmpi sge, %18, %19 : vector<1x256xi32>
    %21 = arith.extui %20 : vector<1x256xi1> to vector<1x256xi32>
    %22 = arith.sitofp %21 : vector<1x256xi32> to vector<1x256xf32>
    %c14_i32 = arith.constant 14 : i32
    %23 = vector.broadcast %c14_i32 : i32 to vector<1x256xi32>
    %24 = arith.cmpi sle, %18, %23 : vector<1x256xi32>
    %25 = arith.extui %24 : vector<1x256xi1> to vector<1x256xi32>
    %26 = arith.sitofp %25 : vector<1x256xi32> to vector<1x256xf32>
    %c0_5 = arith.constant 0 : index
    %c0_6 = arith.constant 0 : index
    %c0_7 = arith.constant 0 : index
    %27 = vector.load %arg2[%c0_5, %c0_6, %c0_7] : memref<1x4x256xf32, #tpu.memory_space<vmem>>, vector<1x4x256xf32>
    %28 = vector.shape_cast %27 : vector<1x4x256xf32> to vector<4x256xf32>
    %c0_8 = arith.constant 0 : index
    %c0_9 = arith.constant 0 : index
    %29 = vector.load %arg3[%c0_8, %c0_9] : memref<8x4xf32, #tpu.memory_space<vmem>>, vector<8x4xf32>
    %cst_10 = arith.constant dense<0.000000e+00> : vector<8x256xf32>
    %30 = tpu.matmul %29, %28, %cst_10 {dimension_numbers = #tpu.dot_dimension_numbers<[1], [0], [0], [1], [0, 0, 1, 1], [], []>} : vector<8x4xf32>, vector<4x256xf32>, vector<8x256xf32> -> vector<8x256xf32>
    %c0_11 = arith.constant 0 : index
    %c0_12 = arith.constant 0 : index
    %31 = vector.load %arg4[%c0_11, %c0_12] : memref<8x1xf32, #tpu.memory_space<vmem>>, vector<8x1xf32>
    %32 = vector.broadcast %31 : vector<8x1xf32> to vector<8x256xf32>
    %33 = arith.addf %30, %32 : vector<8x256xf32>
    %c0_13 = arith.constant 0 : index
    %34 = memref.load %arg1[%c0_13] : memref<3xf32, #tpu.memory_space<smem>>
    %c0_14 = arith.constant 0 : index
    %c0_15 = arith.constant 0 : index
    %35 = vector.load %arg5[%c0_14, %c0_15] : memref<4x4xf32, #tpu.memory_space<vmem>>, vector<4x4xf32>
    %cst_16 = arith.constant dense<0.000000e+00> : vector<4x256xf32>
    %36 = tpu.matmul %35, %28, %cst_16 {dimension_numbers = #tpu.dot_dimension_numbers<[1], [0], [0], [1], [0, 0, 1, 1], [], []>} : vector<4x4xf32>, vector<4x256xf32>, vector<4x256xf32> -> vector<4x256xf32>
    %c0_17 = arith.constant 0 : index
    %c0_18 = arith.constant 0 : index
    %37 = vector.load %arg6[%c0_17, %c0_18] : memref<4x1xf32, #tpu.memory_space<vmem>>, vector<4x1xf32>
    %38 = vector.broadcast %37 : vector<4x1xf32> to vector<4x256xf32>
    %39 = arith.addf %36, %38 : vector<4x256xf32>
    %cst_19 = arith.constant 0.000000e+00 : f32
    %40 = vector.broadcast %cst_19 : f32 to vector<4x256xf32>
    %41 = arith.maximumf %39, %40 : vector<4x256xf32>
    %c0_20 = arith.constant 0 : index
    %c128 = arith.constant 128 : index
    %42 = vector.load %arg24[%c0_20, %c128] : memref<4x512xf32, #tpu.memory_space<vmem>>, vector<4x256xf32>
    tpu.vector_store %arg24[%c0_20, %c128], %41 {strides = array<i32>} : memref<4x512xf32, #tpu.memory_space<vmem>>, vector<4x256xf32>,
    %c0_21 = arith.constant 0 : index
    %c111 = arith.constant 111 : index
    %43 = vector.load %arg24[%c0_21, %c111] : memref<4x512xf32, #tpu.memory_space<vmem>>, vector<4x256xf32>
    %44 = vector.broadcast %22 : vector<1x256xf32> to vector<4x256xf32>
    %45 = arith.mulf %43, %44 : vector<4x256xf32>
    %c0_22 = arith.constant 0 : index
    %c112 = arith.constant 112 : index
    %46 = vector.load %arg24[%c0_22, %c112] : memref<4x512xf32, #tpu.memory_space<vmem>>, vector<4x256xf32>
    %c0_23 = arith.constant 0 : index
    %c113 = arith.constant 113 : index
    %47 = vector.load %arg24[%c0_23, %c113] : memref<4x512xf32, #tpu.memory_space<vmem>>, vector<4x256xf32>
    %48 = vector.broadcast %26 : vector<1x256xf32> to vector<4x256xf32>
    %49 = arith.mulf %47, %48 : vector<4x256xf32>
    %c0_24 = arith.constant 0 : index
    %c127 = arith.constant 127 : index
    %50 = vector.load %arg24[%c0_24, %c127] : memref<4x512xf32, #tpu.memory_space<vmem>>, vector<4x256xf32>
    %51 = vector.broadcast %22 : vector<1x256xf32> to vector<4x256xf32>
    %52 = arith.mulf %50, %51 : vector<4x256xf32>
    %c0_25 = arith.constant 0 : index
    %c128_26 = arith.constant 128 : index
    %53 = vector.load %arg24[%c0_25, %c128_26] : memref<4x512xf32, #tpu.memory_space<vmem>>, vector<4x256xf32>
    %c0_27 = arith.constant 0 : index
    %c129 = arith.constant 129 : index
    %54 = vector.load %arg24[%c0_27, %c129] : memref<4x512xf32, #tpu.memory_space<vmem>>, vector<4x256xf32>
    %55 = vector.broadcast %26 : vector<1x256xf32> to vector<4x256xf32>
    %56 = arith.mulf %54, %55 : vector<4x256xf32>
    %c0_28 = arith.constant 0 : index
    %c143 = arith.constant 143 : index
    %57 = vector.load %arg24[%c0_28, %c143] : memref<4x512xf32, #tpu.memory_space<vmem>>, vector<4x256xf32>
    %58 = vector.broadcast %22 : vector<1x256xf32> to vector<4x256xf32>
    %59 = arith.mulf %57, %58 : vector<4x256xf32>
    %c0_29 = arith.constant 0 : index
    %c144 = arith.constant 144 : index
    %60 = vector.load %arg24[%c0_29, %c144] : memref<4x512xf32, #tpu.memory_space<vmem>>, vector<4x256xf32>
    %c0_30 = arith.constant 0 : index
    %c145 = arith.constant 145 : index
    %61 = vector.load %arg24[%c0_30, %c145] : memref<4x512xf32, #tpu.memory_space<vmem>>, vector<4x256xf32>
    %62 = vector.broadcast %26 : vector<1x256xf32> to vector<4x256xf32>
    %63 = arith.mulf %61, %62 : vector<4x256xf32>
    %64 = tpu.concatenate %45, %46, %49, %52, %53, %56, %59, %60, %63 in 0 : vector<4x256xf32>, vector<4x256xf32>, vector<4x256xf32>, vector<4x256xf32>, vector<4x256xf32>, vector<4x256xf32>, vector<4x256xf32>, vector<4x256xf32>, vector<4x256xf32> -> vector<36x256xf32>
    %c0_31 = arith.constant 0 : index
    %c0_32 = arith.constant 0 : index
    %65 = vector.load %arg7[%c0_31, %c0_32] : memref<4x36xf32, #tpu.memory_space<vmem>>, vector<4x36xf32>
    %cst_33 = arith.constant dense<0.000000e+00> : vector<4x256xf32>
    %66 = tpu.matmul %65, %64, %cst_33 {dimension_numbers = #tpu.dot_dimension_numbers<[1], [0], [0], [1], [0, 0, 1, 1], [], []>} : vector<4x36xf32>, vector<36x256xf32>, vector<4x256xf32> -> vector<4x256xf32>
    %c0_34 = arith.constant 0 : index
    %c0_35 = arith.constant 0 : index
    %67 = vector.load %arg8[%c0_34, %c0_35] : memref<4x1xf32, #tpu.memory_space<vmem>>, vector<4x1xf32>
    %68 = vector.broadcast %67 : vector<4x1xf32> to vector<4x256xf32>
    %69 = arith.addf %66, %68 : vector<4x256xf32>
    %cst_36 = arith.constant 0.000000e+00 : f32
    %70 = vector.broadcast %cst_36 : f32 to vector<4x256xf32>
    %71 = arith.maximumf %69, %70 : vector<4x256xf32>
    %c0_37 = arith.constant 0 : index
    %c0_38 = arith.constant 0 : index
    %72 = vector.load %arg9[%c0_37, %c0_38] : memref<8x4xf32, #tpu.memory_space<vmem>>, vector<8x4xf32>
    %cst_39 = arith.constant dense<0.000000e+00> : vector<8x256xf32>
    %73 = tpu.matmul %72, %71, %cst_39 {dimension_numbers = #tpu.dot_dimension_numbers<[1], [0], [0], [1], [0, 0, 1, 1], [], []>} : vector<8x4xf32>, vector<4x256xf32>, vector<8x256xf32> -> vector<8x256xf32>
    %c0_40 = arith.constant 0 : index
    %c0_41 = arith.constant 0 : index
    %74 = vector.load %arg10[%c0_40, %c0_41] : memref<8x1xf32, #tpu.memory_space<vmem>>, vector<8x1xf32>
    %75 = vector.broadcast %74 : vector<8x1xf32> to vector<8x256xf32>
    %76 = arith.addf %73, %75 : vector<8x256xf32>
    %77 = vector.broadcast %34 : f32 to vector<8x256xf32>
    %78 = arith.mulf %77, %76 : vector<8x256xf32>
    %79 = arith.addf %33, %78 : vector<8x256xf32>
    %c1 = arith.constant 1 : index
    %80 = memref.load %arg1[%c1] : memref<3xf32, #tpu.memory_space<smem>>
    %c0_42 = arith.constant 0 : index
    %c0_43 = arith.constant 0 : index
    %81 = vector.load %arg11[%c0_42, %c0_43] : memref<4x8xf32, #tpu.memory_space<vmem>>, vector<4x8xf32>
    %cst_44 = arith.constant dense<0.000000e+00> : vector<4x256xf32>
    %82 = tpu.matmul %81, %79, %cst_44 {dimension_numbers = #tpu.dot_dimension_numbers<[1], [0], [0], [1], [0, 0, 1, 1], [], []>} : vector<4x8xf32>, vector<8x256xf32>, vector<4x256xf32> -> vector<4x256xf32>
    %c0_45 = arith.constant 0 : index
    %c0_46 = arith.constant 0 : index
    %83 = vector.load %arg12[%c0_45, %c0_46] : memref<4x1xf32, #tpu.memory_space<vmem>>, vector<4x1xf32>
    %84 = vector.broadcast %83 : vector<4x1xf32> to vector<4x256xf32>
    %85 = arith.addf %82, %84 : vector<4x256xf32>
    %cst_47 = arith.constant 0.000000e+00 : f32
    %86 = vector.broadcast %cst_47 : f32 to vector<4x256xf32>
    %87 = arith.maximumf %85, %86 : vector<4x256xf32>
    %c0_48 = arith.constant 0 : index
    %c128_49 = arith.constant 128 : index
    %88 = vector.load %arg24[%c0_48, %c128_49] : memref<4x512xf32, #tpu.memory_space<vmem>>, vector<4x256xf32>
    tpu.vector_store %arg24[%c0_48, %c128_49], %87 {strides = array<i32>} : memref<4x512xf32, #tpu.memory_space<vmem>>, vector<4x256xf32>,
    %c0_50 = arith.constant 0 : index
    %c111_51 = arith.constant 111 : index
    %89 = vector.load %arg24[%c0_50, %c111_51] : memref<4x512xf32, #tpu.memory_space<vmem>>, vector<4x256xf32>
    %90 = vector.broadcast %22 : vector<1x256xf32> to vector<4x256xf32>
    %91 = arith.mulf %89, %90 : vector<4x256xf32>
    %c0_52 = arith.constant 0 : index
    %c112_53 = arith.constant 112 : index
    %92 = vector.load %arg24[%c0_52, %c112_53] : memref<4x512xf32, #tpu.memory_space<vmem>>, vector<4x256xf32>
    %c0_54 = arith.constant 0 : index
    %c113_55 = arith.constant 113 : index
    %93 = vector.load %arg24[%c0_54, %c113_55] : memref<4x512xf32, #tpu.memory_space<vmem>>, vector<4x256xf32>
    %94 = vector.broadcast %26 : vector<1x256xf32> to vector<4x256xf32>
    %95 = arith.mulf %93, %94 : vector<4x256xf32>
    %c0_56 = arith.constant 0 : index
    %c127_57 = arith.constant 127 : index
    %96 = vector.load %arg24[%c0_56, %c127_57] : memref<4x512xf32, #tpu.memory_space<vmem>>, vector<4x256xf32>
    %97 = vector.broadcast %22 : vector<1x256xf32> to vector<4x256xf32>
    %98 = arith.mulf %96, %97 : vector<4x256xf32>
    %c0_58 = arith.constant 0 : index
    %c128_59 = arith.constant 128 : index
    %99 = vector.load %arg24[%c0_58, %c128_59] : memref<4x512xf32, #tpu.memory_space<vmem>>, vector<4x256xf32>
    %c0_60 = arith.constant 0 : index
    %c129_61 = arith.constant 129 : index
    %100 = vector.load %arg24[%c0_60, %c129_61] : memref<4x512xf32, #tpu.memory_space<vmem>>, vector<4x256xf32>
    %101 = vector.broadcast %26 : vector<1x256xf32> to vector<4x256xf32>
    %102 = arith.mulf %100, %101 : vector<4x256xf32>
    %c0_62 = arith.constant 0 : index
    %c143_63 = arith.constant 143 : index
    %103 = vector.load %arg24[%c0_62, %c143_63] : memref<4x512xf32, #tpu.memory_space<vmem>>, vector<4x256xf32>
    %104 = vector.broadcast %22 : vector<1x256xf32> to vector<4x256xf32>
    %105 = arith.mulf %103, %104 : vector<4x256xf32>
    %c0_64 = arith.constant 0 : index
    %c144_65 = arith.constant 144 : index
    %106 = vector.load %arg24[%c0_64, %c144_65] : memref<4x512xf32, #tpu.memory_space<vmem>>, vector<4x256xf32>
    %c0_66 = arith.constant 0 : index
    %c145_67 = arith.constant 145 : index
    %107 = vector.load %arg24[%c0_66, %c145_67] : memref<4x512xf32, #tpu.memory_space<vmem>>, vector<4x256xf32>
    %108 = vector.broadcast %26 : vector<1x256xf32> to vector<4x256xf32>
    %109 = arith.mulf %107, %108 : vector<4x256xf32>
    %110 = tpu.concatenate %91, %92, %95, %98, %99, %102, %105, %106, %109 in 0 : vector<4x256xf32>, vector<4x256xf32>, vector<4x256xf32>, vector<4x256xf32>, vector<4x256xf32>, vector<4x256xf32>, vector<4x256xf32>, vector<4x256xf32>, vector<4x256xf32> -> vector<36x256xf32>
    %c0_68 = arith.constant 0 : index
    %c0_69 = arith.constant 0 : index
    %111 = vector.load %arg13[%c0_68, %c0_69] : memref<4x36xf32, #tpu.memory_space<vmem>>, vector<4x36xf32>
    %cst_70 = arith.constant dense<0.000000e+00> : vector<4x256xf32>
    %112 = tpu.matmul %111, %110, %cst_70 {dimension_numbers = #tpu.dot_dimension_numbers<[1], [0], [0], [1], [0, 0, 1, 1], [], []>} : vector<4x36xf32>, vector<36x256xf32>, vector<4x256xf32> -> vector<4x256xf32>
    %c0_71 = arith.constant 0 : index
    %c0_72 = arith.constant 0 : index
    %113 = vector.load %arg14[%c0_71, %c0_72] : memref<4x1xf32, #tpu.memory_space<vmem>>, vector<4x1xf32>
    %114 = vector.broadcast %113 : vector<4x1xf32> to vector<4x256xf32>
    %115 = arith.addf %112, %114 : vector<4x256xf32>
    %cst_73 = arith.constant 0.000000e+00 : f32
    %116 = vector.broadcast %cst_73 : f32 to vector<4x256xf32>
    %117 = arith.maximumf %115, %116 : vector<4x256xf32>
    %c0_74 = arith.constant 0 : index
    %c0_75 = arith.constant 0 : index
    %118 = vector.load %arg15[%c0_74, %c0_75] : memref<8x4xf32, #tpu.memory_space<vmem>>, vector<8x4xf32>
    %cst_76 = arith.constant dense<0.000000e+00> : vector<8x256xf32>
    %119 = tpu.matmul %118, %117, %cst_76 {dimension_numbers = #tpu.dot_dimension_numbers<[1], [0], [0], [1], [0, 0, 1, 1], [], []>} : vector<8x4xf32>, vector<4x256xf32>, vector<8x256xf32> -> vector<8x256xf32>
    %c0_77 = arith.constant 0 : index
    %c0_78 = arith.constant 0 : index
    %120 = vector.load %arg16[%c0_77, %c0_78] : memref<8x1xf32, #tpu.memory_space<vmem>>, vector<8x1xf32>
    %121 = vector.broadcast %120 : vector<8x1xf32> to vector<8x256xf32>
    %122 = arith.addf %119, %121 : vector<8x256xf32>
    %123 = vector.broadcast %80 : f32 to vector<8x256xf32>
    %124 = arith.mulf %123, %122 : vector<8x256xf32>
    %125 = arith.addf %79, %124 : vector<8x256xf32>
    %c2 = arith.constant 2 : index
    %126 = memref.load %arg1[%c2] : memref<3xf32, #tpu.memory_space<smem>>
    %c0_79 = arith.constant 0 : index
    %c0_80 = arith.constant 0 : index
    %127 = vector.load %arg17[%c0_79, %c0_80] : memref<4x8xf32, #tpu.memory_space<vmem>>, vector<4x8xf32>
    %cst_81 = arith.constant dense<0.000000e+00> : vector<4x256xf32>
    %128 = tpu.matmul %127, %125, %cst_81 {dimension_numbers = #tpu.dot_dimension_numbers<[1], [0], [0], [1], [0, 0, 1, 1], [], []>} : vector<4x8xf32>, vector<8x256xf32>, vector<4x256xf32> -> vector<4x256xf32>
    %c0_82 = arith.constant 0 : index
    %c0_83 = arith.constant 0 : index
    %129 = vector.load %arg18[%c0_82, %c0_83] : memref<4x1xf32, #tpu.memory_space<vmem>>, vector<4x1xf32>
    %130 = vector.broadcast %129 : vector<4x1xf32> to vector<4x256xf32>
    %131 = arith.addf %128, %130 : vector<4x256xf32>
    %cst_84 = arith.constant 0.000000e+00 : f32
    %132 = vector.broadcast %cst_84 : f32 to vector<4x256xf32>
    %133 = arith.maximumf %131, %132 : vector<4x256xf32>
    %c0_85 = arith.constant 0 : index
    %c128_86 = arith.constant 128 : index
    %134 = vector.load %arg24[%c0_85, %c128_86] : memref<4x512xf32, #tpu.memory_space<vmem>>, vector<4x256xf32>
    tpu.vector_store %arg24[%c0_85, %c128_86], %133 {strides = array<i32>} : memref<4x512xf32, #tpu.memory_space<vmem>>, vector<4x256xf32>,
    %c0_87 = arith.constant 0 : index
    %c111_88 = arith.constant 111 : index
    %135 = vector.load %arg24[%c0_87, %c111_88] : memref<4x512xf32, #tpu.memory_space<vmem>>, vector<4x256xf32>
    %136 = vector.broadcast %22 : vector<1x256xf32> to vector<4x256xf32>
    %137 = arith.mulf %135, %136 : vector<4x256xf32>
    %c0_89 = arith.constant 0 : index
    %c112_90 = arith.constant 112 : index
    %138 = vector.load %arg24[%c0_89, %c112_90] : memref<4x512xf32, #tpu.memory_space<vmem>>, vector<4x256xf32>
    %c0_91 = arith.constant 0 : index
    %c113_92 = arith.constant 113 : index
    %139 = vector.load %arg24[%c0_91, %c113_92] : memref<4x512xf32, #tpu.memory_space<vmem>>, vector<4x256xf32>
    %140 = vector.broadcast %26 : vector<1x256xf32> to vector<4x256xf32>
    %141 = arith.mulf %139, %140 : vector<4x256xf32>
    %c0_93 = arith.constant 0 : index
    %c127_94 = arith.constant 127 : index
    %142 = vector.load %arg24[%c0_93, %c127_94] : memref<4x512xf32, #tpu.memory_space<vmem>>, vector<4x256xf32>
    %143 = vector.broadcast %22 : vector<1x256xf32> to vector<4x256xf32>
    %144 = arith.mulf %142, %143 : vector<4x256xf32>
    %c0_95 = arith.constant 0 : index
    %c128_96 = arith.constant 128 : index
    %145 = vector.load %arg24[%c0_95, %c128_96] : memref<4x512xf32, #tpu.memory_space<vmem>>, vector<4x256xf32>
    %c0_97 = arith.constant 0 : index
    %c129_98 = arith.constant 129 : index
    %146 = vector.load %arg24[%c0_97, %c129_98] : memref<4x512xf32, #tpu.memory_space<vmem>>, vector<4x256xf32>
    %147 = vector.broadcast %26 : vector<1x256xf32> to vector<4x256xf32>
    %148 = arith.mulf %146, %147 : vector<4x256xf32>
    %c0_99 = arith.constant 0 : index
    %c143_100 = arith.constant 143 : index
    %149 = vector.load %arg24[%c0_99, %c143_100] : memref<4x512xf32, #tpu.memory_space<vmem>>, vector<4x256xf32>
    %150 = vector.broadcast %22 : vector<1x256xf32> to vector<4x256xf32>
    %151 = arith.mulf %149, %150 : vector<4x256xf32>
    %c0_101 = arith.constant 0 : index
    %c144_102 = arith.constant 144 : index
    %152 = vector.load %arg24[%c0_101, %c144_102] : memref<4x512xf32, #tpu.memory_space<vmem>>, vector<4x256xf32>
    %c0_103 = arith.constant 0 : index
    %c145_104 = arith.constant 145 : index
    %153 = vector.load %arg24[%c0_103, %c145_104] : memref<4x512xf32, #tpu.memory_space<vmem>>, vector<4x256xf32>
    %154 = vector.broadcast %26 : vector<1x256xf32> to vector<4x256xf32>
    %155 = arith.mulf %153, %154 : vector<4x256xf32>
    %156 = tpu.concatenate %137, %138, %141, %144, %145, %148, %151, %152, %155 in 0 : vector<4x256xf32>, vector<4x256xf32>, vector<4x256xf32>, vector<4x256xf32>, vector<4x256xf32>, vector<4x256xf32>, vector<4x256xf32>, vector<4x256xf32>, vector<4x256xf32> -> vector<36x256xf32>
    %c0_105 = arith.constant 0 : index
    %c0_106 = arith.constant 0 : index
    %157 = vector.load %arg19[%c0_105, %c0_106] : memref<4x36xf32, #tpu.memory_space<vmem>>, vector<4x36xf32>
    %cst_107 = arith.constant dense<0.000000e+00> : vector<4x256xf32>
    %158 = tpu.matmul %157, %156, %cst_107 {dimension_numbers = #tpu.dot_dimension_numbers<[1], [0], [0], [1], [0, 0, 1, 1], [], []>} : vector<4x36xf32>, vector<36x256xf32>, vector<4x256xf32> -> vector<4x256xf32>
    %c0_108 = arith.constant 0 : index
    %c0_109 = arith.constant 0 : index
    %159 = vector.load %arg20[%c0_108, %c0_109] : memref<4x1xf32, #tpu.memory_space<vmem>>, vector<4x1xf32>
    %160 = vector.broadcast %159 : vector<4x1xf32> to vector<4x256xf32>
    %161 = arith.addf %158, %160 : vector<4x256xf32>
    %cst_110 = arith.constant 0.000000e+00 : f32
    %162 = vector.broadcast %cst_110 : f32 to vector<4x256xf32>
    %163 = arith.maximumf %161, %162 : vector<4x256xf32>
    %c0_111 = arith.constant 0 : index
    %c0_112 = arith.constant 0 : index
    %164 = vector.load %arg21[%c0_111, %c0_112] : memref<8x4xf32, #tpu.memory_space<vmem>>, vector<8x4xf32>
    %cst_113 = arith.constant dense<0.000000e+00> : vector<8x256xf32>
    %165 = tpu.matmul %164, %163, %cst_113 {dimension_numbers = #tpu.dot_dimension_numbers<[1], [0], [0], [1], [0, 0, 1, 1], [], []>} : vector<8x4xf32>, vector<4x256xf32>, vector<8x256xf32> -> vector<8x256xf32>
    %c0_114 = arith.constant 0 : index
    %c0_115 = arith.constant 0 : index
    %166 = vector.load %arg22[%c0_114, %c0_115] : memref<8x1xf32, #tpu.memory_space<vmem>>, vector<8x1xf32>
    %167 = vector.broadcast %166 : vector<8x1xf32> to vector<8x256xf32>
    %168 = arith.addf %165, %167 : vector<8x256xf32>
    %169 = vector.broadcast %126 : f32 to vector<8x256xf32>
    %170 = arith.mulf %169, %168 : vector<8x256xf32>
    %171 = arith.addf %125, %170 : vector<8x256xf32>
    %c0_116 = arith.constant 0 : index
    %c0_117 = arith.constant 0 : index
    %c0_118 = arith.constant 0 : index
    %172 = vector.load %arg23[%c0_116, %c0_117, %c0_118] : memref<1x8x256xf32, #tpu.memory_space<vmem>>, vector<1x8x256xf32>
    %173 = vector.shape_cast %172 : vector<1x8x256xf32> to vector<8x256xf32>
    %174 = vector.shape_cast %171 : vector<8x256xf32> to vector<1x8x256xf32>
    tpu.vector_store %arg23[%c0_116, %c0_117, %c0_118], %174 {strides = array<i32>} : memref<1x8x256xf32, #tpu.memory_space<vmem>>, vector<1x8x256xf32>,
    return
  }
  func.func @transform_0(%arg0: i32) -> i32 {
    %c0_i32 = arith.constant 0 : i32
    %c0_i32_0 = arith.constant 0 : i32
    return %c0_i32 : i32
  }
  func.func @transform_1(%arg0: i32) -> (i32, i32, i32) {
    %c0_i32 = arith.constant 0 : i32
    %c0_i32_0 = arith.constant 0 : i32
    %c0_i32_1 = arith.constant 0 : i32
    return %arg0, %c0_i32, %c0_i32_0 : i32, i32, i32
  }
  func.func @transform_2(%arg0: i32) -> (i32, i32) {
    %c0_i32 = arith.constant 0 : i32
    %c0_i32_0 = arith.constant 0 : i32
    %c0_i32_1 = arith.constant 0 : i32
    return %c0_i32, %c0_i32_0 : i32, i32
  }
  func.func @transform_3(%arg0: i32) -> (i32, i32) {
    %c0_i32 = arith.constant 0 : i32
    %c0_i32_0 = arith.constant 0 : i32
    %c0_i32_1 = arith.constant 0 : i32
    return %c0_i32, %c0_i32_0 : i32, i32
  }
  func.func @transform_4(%arg0: i32) -> (i32, i32) {
    %c0_i32 = arith.constant 0 : i32
    %c0_i32_0 = arith.constant 0 : i32
    %c0_i32_1 = arith.constant 0 : i32
    return %c0_i32, %c0_i32_0 : i32, i32
  }
  func.func @transform_5(%arg0: i32) -> (i32, i32) {
    %c0_i32 = arith.constant 0 : i32
    %c0_i32_0 = arith.constant 0 : i32
    %c0_i32_1 = arith.constant 0 : i32
    return %c0_i32, %c0_i32_0 : i32, i32
  }
  func.func @transform_6(%arg0: i32) -> (i32, i32) {
    %c0_i32 = arith.constant 0 : i32
    %c0_i32_0 = arith.constant 0 : i32
    %c0_i32_1 = arith.constant 0 : i32
    return %c0_i32, %c0_i32_0 : i32, i32
  }
  func.func @transform_7(%arg0: i32) -> (i32, i32) {
    %c0_i32 = arith.constant 0 : i32
    %c0_i32_0 = arith.constant 0 : i32
    %c0_i32_1 = arith.constant 0 : i32
    return %c0_i32, %c0_i32_0 : i32, i32
  }
  func.func @transform_8(%arg0: i32) -> (i32, i32) {
    %c0_i32 = arith.constant 0 : i32
    %c0_i32_0 = arith.constant 0 : i32
    %c0_i32_1 = arith.constant 0 : i32
    return %c0_i32, %c0_i32_0 : i32, i32
  }
  func.func @transform_9(%arg0: i32) -> (i32, i32) {
    %c0_i32 = arith.constant 0 : i32
    %c0_i32_0 = arith.constant 0 : i32
    %c0_i32_1 = arith.constant 0 : i32
    return %c0_i32, %c0_i32_0 : i32, i32
  }
  func.func @transform_10(%arg0: i32) -> (i32, i32) {
    %c0_i32 = arith.constant 0 : i32
    %c0_i32_0 = arith.constant 0 : i32
    %c0_i32_1 = arith.constant 0 : i32
    return %c0_i32, %c0_i32_0 : i32, i32
  }
  func.func @transform_11(%arg0: i32) -> (i32, i32) {
    %c0_i32 = arith.constant 0 : i32
    %c0_i32_0 = arith.constant 0 : i32
    %c0_i32_1 = arith.constant 0 : i32
    return %c0_i32, %c0_i32_0 : i32, i32
  }
  func.func @transform_12(%arg0: i32) -> (i32, i32) {
    %c0_i32 = arith.constant 0 : i32
    %c0_i32_0 = arith.constant 0 : i32
    %c0_i32_1 = arith.constant 0 : i32
    return %c0_i32, %c0_i32_0 : i32, i32
  }
  func.func @transform_13(%arg0: i32) -> (i32, i32) {
    %c0_i32 = arith.constant 0 : i32
    %c0_i32_0 = arith.constant 0 : i32
    %c0_i32_1 = arith.constant 0 : i32
    return %c0_i32, %c0_i32_0 : i32, i32
  }
  func.func @transform_14(%arg0: i32) -> (i32, i32) {
    %c0_i32 = arith.constant 0 : i32
    %c0_i32_0 = arith.constant 0 : i32
    %c0_i32_1 = arith.constant 0 : i32
    return %c0_i32, %c0_i32_0 : i32, i32
  }
  func.func @transform_15(%arg0: i32) -> (i32, i32) {
    %c0_i32 = arith.constant 0 : i32
    %c0_i32_0 = arith.constant 0 : i32
    %c0_i32_1 = arith.constant 0 : i32
    return %c0_i32, %c0_i32_0 : i32, i32
  }
  func.func @transform_16(%arg0: i32) -> (i32, i32) {
    %c0_i32 = arith.constant 0 : i32
    %c0_i32_0 = arith.constant 0 : i32
    %c0_i32_1 = arith.constant 0 : i32
    return %c0_i32, %c0_i32_0 : i32, i32
  }
  func.func @transform_17(%arg0: i32) -> (i32, i32) {
    %c0_i32 = arith.constant 0 : i32
    %c0_i32_0 = arith.constant 0 : i32
    %c0_i32_1 = arith.constant 0 : i32
    return %c0_i32, %c0_i32_0 : i32, i32
  }
  func.func @transform_18(%arg0: i32) -> (i32, i32) {
    %c0_i32 = arith.constant 0 : i32
    %c0_i32_0 = arith.constant 0 : i32
    %c0_i32_1 = arith.constant 0 : i32
    return %c0_i32, %c0_i32_0 : i32, i32
  }
  func.func @transform_19(%arg0: i32) -> (i32, i32) {
    %c0_i32 = arith.constant 0 : i32
    %c0_i32_0 = arith.constant 0 : i32
    %c0_i32_1 = arith.constant 0 : i32
    return %c0_i32, %c0_i32_0 : i32, i32
  }
  func.func @transform_20(%arg0: i32) -> (i32, i32) {
    %c0_i32 = arith.constant 0 : i32
    %c0_i32_0 = arith.constant 0 : i32
    %c0_i32_1 = arith.constant 0 : i32
    return %c0_i32, %c0_i32_0 : i32, i32
  }
  func.func @transform_21(%arg0: i32) -> (i32, i32) {
    %c0_i32 = arith.constant 0 : i32
    %c0_i32_0 = arith.constant 0 : i32
    %c0_i32_1 = arith.constant 0 : i32
    return %c0_i32, %c0_i32_0 : i32, i32
  }
  func.func @transform_22(%arg0: i32) -> (i32, i32, i32) {
    %c0_i32 = arith.constant 0 : i32
    %c0_i32_0 = arith.constant 0 : i32
    %c0_i32_1 = arith.constant 0 : i32
    return %arg0, %c0_i32, %c0_i32_0 : i32, i32, i32
  }
}

</mosaic_0001>

<bundles_post_ra>
// kernel: stacked_resnext_block_forward.1
= control target key start
LH: loop header
LB: loop body
LE: loop exit
PB: predicated region body
PF: predicated region fallthrough
CT: control target
= control target key end

     0   :  { %s3141_s0 = inlined_call_operand.vmem [shape: f32[3], index: 0, kind: input, shape index: {}]   ;;  %s3142_s1 = inlined_call_operand.vmem [shape: f32[2,4,256], index: 1, kind: input, shape index: {}]   ;;  %s3143_s2 = inlined_call_operand.vmem [shape: f32[8,4], index: 2, kind: input, shape index: {}]   ;;  %s3144_s3 = inlined_call_operand.vmem [shape: f32[8,1], index: 3, kind: input, shape index: {}]   ;;  %s3145_s4 = inlined_call_operand.vmem [shape: f32[4,4], index: 4, kind: input, shape index: {}]   ;;  %s3146_s5 = inlined_call_operand.vmem [shape: f32[4,1], index: 5, kind: input, shape index: {}]   ;;  %s3147_s6 = inlined_call_operand.vmem [shape: f32[4,36], index: 6, kind: input, shape index: {}]   ;;  %s3148_s7 = inlined_call_operand.vmem [shape: f32[4,1], index: 7, kind: input, shape index: {}]   ;;  %s3149_s8 = inlined_call_operand.vmem [shape: f32[8,4], index: 8, kind: input, shape index: {}]   ;;  %s3150_s9 = inlined_call_operand.vmem [shape: f32[8,1], index: 9, kind: input, shape index: {}]   ;;  %s3151_s10 = inlined_call_operand.vmem [shape: f32[4,8], index: 10, kind: input, shape index: {}]   ;;  %s3152_s11 = inlined_call_operand.vmem [shape: f32[4,1], index: 11, kind: input, shape index: {}]   ;;  %s3153_s12 = inlined_call_operand.vmem [shape: f32[4,36], index: 12, kind: input, shape index: {}]   ;;  %s3154_s13 = inlined_call_operand.vmem [shape: f32[4,1], index: 13, kind: input, shape index: {}]   ;;  %s3155_s14 = inlined_call_operand.vmem [shape: f32[8,4], index: 14, kind: input, shape index: {}]   ;;  %s3156_s15 = inlined_call_operand.vmem [shape: f32[8,1], index: 15, kind: input, shape index: {}]   ;;  %s3157_s16 = inlined_call_operand.vmem [shape: f32[4,8], index: 16, kind: input, shape index: {}]   ;;  %s3158_s17 = inlined_call_operand.vmem [shape: f32[4,1], index: 17, kind: input, shape index: {}]   ;;  %s3159_s18 = inlined_call_operand.vmem [shape: f32[4,36], index: 18, kind: input, shape index: {}]   ;;  %s3160_s19 = inlined_call_operand.vmem [shape: f32[4,1], index: 19, kind: input, shape index: {}]   ;;  %s3161_s20 = inlined_call_operand.vmem [shape: f32[8,4], index: 20, kind: input, shape index: {}]   ;;  %s3162_s21 = inlined_call_operand.vmem [shape: f32[8,1], index: 21, kind: input, shape index: {}]   ;;  %s3163_s22 = inlined_call_operand.vmem [shape: f32[2,8,256], index: 22, kind: output, shape index: {}]  }
   0x1   :  { %3172 = sst [smem:[#allocation6_spill]] %s3141_s0 }
   0x2   :  { %3173 = sst [smem:[#allocation7_spill]] %s3142_s1 }
   0x3   :  { %3174 = sst [smem:[#allocation8_spill]] %s3143_s2 }
   0x4   :  { %3175 = sst [smem:[#allocation9_spill]] %s3144_s3 }
   0x5   :  { %3176 = sst [smem:[#allocation10_spill]] %s3145_s4 }
   0x6   :  { %3177 = sst [smem:[#allocation11_spill]] %s3146_s5 }
   0x7   :  { %3178 = sst [smem:[#allocation12_spill]] %s3147_s6 }
   0x8   :  { %27 = vsyncpa [#allocation4], 0  ;;  %s2614_s3 = smov 0  }
   0x9 LB: > { %s2620_s28 = sadd.s32 4294967295, %s2482_s3   ;;  %p2363_p0 = scmp.ge.s32.totalorder %s2482_s3, 1  ;;  %s2482_s3 = sphi %s2614_s3, %s33_s3  }
   0xa   : > { %p531_p1 = scmp.lt.s32.totalorder %s2482_s3, 3  ;;  %s3179_s4 = sld [smem:[#allocation6_spill]] }
   0xb   : > { %p2416_p3 = scmp.eq.s32.totalorder %s2620_s28, 0 }
   0xc   : > { %p2627_p2 = pnand %p2363_p0, %p531_p1 }
   0xe   : > { %p2412_p4 = pneg %p2627_p2 }
  0x10   : > { %s544_s0 = sshll.u32 %s3179_s4, 4  ;;  %p2413_p5 = pnand %p2416_p3, %p2412_p4  ;;  %s545_s0 = int_to_ptr.vmem [resolvable:$true] %s544_s0 }
  0x11   : > { %s2457_s1 = scalar_lea.vmem %s545_s0, 16  ;;  %p2465_p10 = scmp.lt.s32.totalorder %s545_s0, %s545_s0 }
  0x12   : > { %p2458_p6 = scmp.ne.s32.totalorder %s545_s0, %s2457_s1  ;;  %p2459_p7 = pneg %p2413_p5 }
  0x13   : > { %p2466_p11 = scmp.lt.s32.totalorder %s2457_s1, %s2457_s1 }
  0x14   : > { %p2460_p8 = pnand %p2459_p7, %p2458_p6 }
  0x15   : > { %p2467_p12 = por %p2466_p11, %p2465_p10 }
  0x16   : > { %p2461_p9 = pneg %p2460_p8 }
  0x18   : > { %p2468_p13 = pnand %p2467_p12, %p2461_p9 }
  0x1a   : > { %2471 = shalt.err (!%p2468_p13)
}
  0x1b   : > { %s2484_s5 = smov [#allocation3]   ;;  %625 = sbr.rel (%p2627_p2) target bundleno = 2721 (0xaa1), region = 108 }
  0x1c   : > { %2415 = dma.vmem_to_smem (!%p2413_p5), %s545_s0, 16, %s2484_s5, [#allocation4]  }
  0x20   : > { %2477 = dma.done.wait (%p2416_p3), [#allocation4], 16  }
  0x21   : > { %2479 = vsyncadd (%p2416_p3), [#allocation4], 4294967280 }
  0x22   : > { %631 = sfence }
  0x23   : > { %p688_p0 = scmp.lt.s32.totalorder %s2620_s28, 1  ;;  %v2485_v0 = vmov 0.0   ;;  %v2486_v1 = vmov 0   ;;  %s3181_s25 = sld [smem:[#allocation11_spill]]  ;;  %v700_v3 = vlaneseq  ;;  %vm753_vm0 = vcmask 1043456  }
  0x24   : > { %822 = vmatprep.mubr.f32.mxu1 %v2485_v0  ;;  %698 = vst [vmem:[#allocation2] sm:$0xff] %v2485_v0  ;;  %699 = vst [vmem:[#allocation2 + $0x8] sm:$0xff] %v2485_v0  ;;  %2441 = vset.pattern.permute.xlu0 %v2486_v1  ;;  %s3182_s29 = sld [smem:[#allocation7_spill]]  ;;  %vm749_vm3 = vcmask 31744   ;;  %s2487_s6 = smov 17   ;;  %vm977_vm6 = vcmask 138240  }
  0x25   : > { %s3192_s28 = smov (!%p688_p0, %s2620_s28), 1  ;;  %2442 = vset.pattern.permute.xlu1 %v2486_v1  ;;  %v701_v4 = vand.u32 127, %v700_v3  ;;  %1252 = vmatprep.mubr.f32.mxu0 %v2485_v0  ;;  %s3183_s23 = sld [smem:[#allocation8_spill]]  ;;  %vm968_vm7 = vcmask 121856   ;;  %vm959_vm8 = vcmask 7168   ;;  %vm947_vm9 = vcmask 1039360  }
  0x26   : > { %s2406_s26 = sshll.u32 %s3192_s28, 3  ;;  %s3184_s24 = sld [smem:[#allocation10_spill]]  ;;  %vm938_vm10 = vcmask 924672   ;;  %vm1052_vm11 = vcmask 900096   ;;  %vm1098_vm12 = vcmask 769024   ;;  %vm1067_vm13 = vcmask 785408  }
  0x27   : > { %v702_v5 = vadd.s32 128, %v701_v4  ;;  %v707_v6 = vand.u32 15, %v701_v4  ;;  %s2490_s2 = smov 113   ;;  %s3168_s27 = smov 127   ;;  %vm1083_vm14 = vcmask 777216   ;;  %vm1026_vm15 = vcmask 916480  }
  0x28   : > { %s2494_s4 = smov 94   ;;  %s2495_s0 = smov 96  }
  0x29   : > { %v831_v2 = vld [vmem:[%s3181_s25] sm:$0xf]  ;;  %v714_v9 = vand.u32 15, %v702_v5  ;;  %vm733_vm1 = vcmp.le.s32.totalorder %v707_v6, 14  ;;  %vm727_vm2 = vcmp.ge.s32.totalorder %v707_v6, 1  ;;  %s2488_s25 = smov 15  }
  0x2a   : > { %834 = vperm.xlu0 %2441, %v831_v2   ;;  %s692_s30 = scalar_lea.vmem %s3182_s29, %s2406_s26  ;;  %v2374_v11 = vsel %vm733_vm1, 1.0, %v2485_v0  ;;  %v2372_v12 = vsel %vm727_vm2, 1.0, %v2485_v0  ;;  %s2489_s26 = smov 1   ;;  %vm1010_vm1 = vcmask 1031168   ;;  %vm926_vm2 = vcmask 908288  }
  0x2b   : > { %v739_v7 = vld [vmem:[%s692_s30] sm:$0xff]  ;;  %vm734_vm4 = vcmp.le.s32.totalorder %v714_v9, 14  ;;  %vm728_vm5 = vcmp.ge.s32.totalorder %v714_v9, 1  ;;  %s3170_s29 = smov 111   ;;  %v955_v18 = vld [vmem:[#allocation2 + $0xc] sm:$0xf] }
  0x2c   : > { %v748_v8 = vcombine.high %v739_v7, %v739_v7  ;;  %v740_v10 = vld [vmem:[%s3183_s23] sm:$0xff]  ;;  %v2375_v13 = vsel %vm734_vm4, 1.0, %v2485_v0  ;;  %v2373_v14 = vsel %vm728_vm5, 1.0, %v2485_v0  ;;  %v1076_v19 = vcombine.low %v955_v18, %v955_v18  ;;  %s2493_s30 = smov 95   ;;  %s2496_s23 = smov 110  }
  0x2d   : > { %v934_v15 = vcombine.low %v2374_v11, %v2375_v13  ;;  %v922_v16 = vcombine.low %v2372_v12, %v2373_v14  ;;  %v830_v17 = vld [vmem:[%s3184_s24] sm:$0xf]  ;;  %s3166_s1 = smov 126   ;;  %s3164_s5 = smov 112   ;;  %vm1180_vm4 = vcmask 293888   ;;  %vm1361_vm5 = vcmask 64512  }
  0x2e   : > { %2376 = vmatprep.subr.msk.mxu1 %vm753_vm0, %v748_v8  ;;  %s3188_s24 = smov 112  }
  0x2f   : > { %2377 = vmatpush1.msk.msra.mxu1 %vm753_vm0, %v739_v7  ;;  %974 = vrot.lane.b32.xlu0 %v934_v15, %s2487_s6 }
  0x30   : > { %2378 = vmatmul.mubr.msk.f32.vlgmr.msra.gmra.mxu1 %vm749_vm3, %v740_v10  ;;  %2379 = vmatprep.subr.msk.mxu1 %vm753_vm0, %v748_v8 }
  0x31   : > { %2380 = vmatpush1.msk.msra.mxu1 %vm753_vm0, %v739_v7  ;;  %904 = vmatprep.mubr.f32.mxu1 %v2485_v0 }
  0x32   : > { %965 = vrot.lane.b32.xlu1 %v922_v16, %s2488_s25  ;;  %s3190_s25 = smov 127  }
  0x33   : > { %935 = vrot.lane.b32.xlu0 %v934_v15, %s2490_s2  ;;  %s3186_s2 = sld [smem:[#allocation12_spill]] }
  0x34   : > { %2381 = vmatmul.mubr.msk.f32.vlgmr.msra.gmra.mxu1 %vm749_vm3, %v830_v17 }
  0x35   : > { %1341 = vmatprep.mubr.f32.mxu1 %v2485_v0 }
  0x36   : > { %956 = vrot.lane.b32.xlu1 %v934_v15, %s2489_s26  ;;  %s829_s26 = sld [smem:[#allocation3]] }
  0x3a   : > { %944 = vrot.lane.b32.xlu1 %v922_v16, %s3168_s27 }
  0x3e   : > { %923 = vrot.lane.b32.xlu1 %v922_v16, %s3170_s29 }
  0x42   : > { %1081 = vrot.lane.b32.xlu1 %v1076_v19, %s2493_s30 }
  0xa4   : > { %v966_v21 = vpop.permute.xlu1 %965 }
  0xa5   : > { %v835_v20 = vpop.permute.xlu0 %834  ;;  %v2681_v24 = vrot.slane %v966_v21, 4 }
  0xa7   : > { %v973_v28 = vmul.f32 %v2681_v24, %v955_v18  ;;  %v2703_v42 = vsel %vm968_vm7, %v2681_v24, %v966_v21 }
  0xa8   : > { %v957_v25 = vpop.permute.xlu1 %956 }
  0xa9   : > { %v975_v22 = vpop.permute.xlu0 %974  ;;  %v2683_v26 = vrot.slane %v957_v25, 4 }
  0xaa   : > { %v2679_v23 = vrot.slane %v975_v22, 4 }
  0xab   : > { %v964_v29 = vmul.f32 %v2683_v26, %v955_v18  ;;  %v2714_v48 = vsel %vm959_vm8, %v2683_v26, %v957_v25 }
  0xac   : > { %v982_v27 = vmul.f32 %v2679_v23, %v955_v18  ;;  %v2698_v40 = vsel %vm977_vm6, %v2679_v23, %v975_v22  ;;  %v945_v50 = vpop.permute.xlu1 %944 }
  0xad   : > { %v1045_v30 = vcombine.low %v964_v29, %v964_v29  ;;  %v936_v43 = vpop.permute.xlu0 %935  ;;  %v2720_v51 = vrot.slane %v945_v50, 4 }
  0xae   : > { %1096 = vrot.lane.b32.xlu0 %v982_v27, %s2494_s4  ;;  %v2710_v45 = vrot.slane %v936_v43, 4 }
  0xaf   : > { %v2731_v57 = vsel %vm947_vm9, %v2720_v51, %v945_v50 }
  0xb0   : > { %v2738_v60 = vsel %vm938_vm10, %v2710_v45, %v936_v43  ;;  %v924_v8 = vpop.permute.xlu1 %923 }
  0xb2   : > { %1065 = vrot.lane.b32.xlu0 %v973_v28, %s2495_s0 }
  0xb4   : > { %v1082_v10 = vpop.permute.xlu1 %1081 }
  0xb6   : > { %1050 = vrot.lane.b32.xlu0 %v1045_v30, %s2496_s23 }
  0xf0   : > { %v2691_v31 = vpop.f32.mrf.mxu1 }
  0xf2   : > { %v2693_v32 = vpop.f32.mrf.mxu1 }
  0xf4   : > { %v906_v33 = vpop.f32.mrf.mxu1 }
  0xf5   : > { %v907_v34 = vadd.f32 %v906_v33, %v835_v20 }
  0xf6   : > { %v908_v35 = vpop.f32.mrf.mxu1 }
  0xf7   : > { %v909_v36 = vadd.f32 %v908_v35, %v835_v20  ;;  %v911_v37 = vmax.f32 %v907_v34, 0.0 }
  0xf9   : > { %v912_v38 = vmax.f32 %v909_v36, 0.0  ;;  %v2451_v46 = vcombine.low %v911_v37, %v911_v37 }
  0xfb   : > { %v915_v39 = vcombine.low %v911_v37, %v912_v38  ;;  %v2452_v52 = vcombine.low %v912_v38, %v912_v38 }
  0xfd   : > { %917 = vst [vmem:[#allocation2 + $0x4] sm:$0xff] %v915_v39  ;;  %1079 = vrot.lane.b32.xlu0 %v915_v39, %s2493_s30  ;;  %v981_v41 = vmul.f32 %v2698_v40, %v915_v39  ;;  %v972_v47 = vmul.f32 %v2703_v42, %v915_v39  ;;  %v963_v53 = vmul.f32 %v2714_v48, %v915_v39 }
  0xff   : > { %v1044_v55 = vcombine.low %v963_v53, %v963_v53  ;;  %v1091_v63 = vcombine.high %v981_v41, %v981_v41  ;;  %v1060_v2 = vcombine.high %v972_v47, %v972_v47 }
 0x101   : > { %1034 = vrot.lane.b32.xlu0 %v915_v39, %s3170_s29  ;;  %v2773_v39 = vrot.slane %v924_v8, 4 }
 0x104   : > { %v2705_v44 = vld [vmem:[#allocation2] sm:$0xff]  ;;  %v2716_v49 = vld [vmem:[#allocation2 + $0x8] sm:$0xf] }
 0x105   : > { %992 = vrot.lane.b32.xlu1 %v2705_v44, %s3168_s27  ;;  %1092 = vrot.lane.b32.xlu0 %v981_v41, %s2494_s4  ;;  %v943_v54 = vmul.f32 %v2710_v45, %v2716_v49  ;;  %v952_v56 = vmul.f32 %v2720_v51, %v2716_v49  ;;  %v951_v58 = vmul.f32 %v2731_v57, %v2705_v44 }
 0x106   : > { %v942_v61 = vmul.f32 %v2738_v60, %v2705_v44  ;;  %v989_v1 = vcombine.low %v2716_v49, %v2716_v49  ;;  %v988_v4 = vcombine.low %v2705_v44, %v2705_v44 }
 0x107   : > { %v1019_v59 = vcombine.low %v952_v56, %v952_v56  ;;  %v1018_v62 = vcombine.low %v951_v58, %v951_v58 }
 0x108   : > { %v1003_v3 = vcombine.high %v942_v61, %v942_v61 }
 0x109   : > { %1077 = vrot.lane.b32.xlu1 %v2451_v46, %s2493_s30  ;;  %1061 = vrot.lane.b32.xlu0 %v972_v47, %s2495_s0 }
 0x10d   : > { %1036 = vrot.lane.b32.xlu1 %v2452_v52, %s3170_s29  ;;  %1008 = vrot.lane.b32.xlu0 %v943_v54, %s3166_s1 }
 0x111   : > { %1048 = vrot.lane.b32.xlu1 %v963_v53, %s2496_s23  ;;  %1046 = vrot.lane.b32.xlu0 %v1044_v55, %s2496_s23  ;;  %v2785_v55 = vsel %vm926_vm2, %v2773_v39, %v924_v8  ;;  %v1114_v8 = vld [vmem:[%s3148_s7] sm:$0xf] }
 0x115   : > { %1022 = vrot.lane.b32.xlu1 %v951_v58, %s3164_s5  ;;  %1024 = vrot.lane.b32.xlu0 %v1019_v59, %s3164_s5 }
 0x119   : > { %1004 = vrot.lane.b32.xlu1 %v942_v61, %s3166_s1  ;;  %1020 = vrot.lane.b32.xlu0 %v1018_v62, %s3164_s5  ;;  %s3185_s5 = sld [smem:[#allocation9_spill]] }
 0x11d   : > { %1094 = vrot.lane.b32.xlu1 %v1091_v63, %s2494_s4  ;;  %994 = vrot.lane.b32.xlu0 %v989_v1, %s3168_s27  ;;  %v930_v63 = vmul.f32 %v2785_v55, %v2705_v44 }
 0x11f   : > { %v984_v44 = vcombine.high %v930_v63, %v930_v63 }
 0x120   : > { %v1097_v5 = vpop.permute.xlu0 %1096 }
 0x121   : > { %1063 = vrot.lane.b32.xlu1 %v1060_v2, %s2495_s0 }
 0x124   : > { %v1066_v6 = vpop.permute.xlu0 %1065 }
 0x125   : > { %1006 = vrot.lane.b32.xlu1 %v1003_v3, %s3166_s1  ;;  %v931_v3 = vmul.f32 %v2773_v39, %v2716_v49  ;;  %s2388_s1 = sld [smem:[#allocation3 + $0x1]] }
 0x128   : > { %v1051_v7 = vpop.permute.xlu0 %1050 }
 0x129   : > { %990 = vrot.lane.b32.xlu1 %v988_v4, %s3168_s27 }
 0x16f   : > { %v1080_v9 = vpop.permute.xlu0 %1079 }
 0x170   : > { %v1085_v56 = vsel %vm1083_vm14, %v1080_v9, %v1082_v10  ;;  %v741_v10 = vld [vmem:[%s3185_s5] sm:$0xff]  ;;  %s2407_s5 = sshll.u32 %s3192_s28, 4 }
 0x173   : > { %v1035_v11 = vpop.permute.xlu0 %1034 }
 0x177   : > { %v2755_v12 = vpop.permute.xlu1 %992  ;;  %v1093_v13 = vpop.permute.xlu0 %1092 }
 0x178   : > { %1156 = vrot.lane.b32.xlu0 %v1093_v13, %s2487_s6 }
 0x17b   : > { %v1078_v14 = vpop.permute.xlu1 %1077  ;;  %v1062_v15 = vpop.permute.xlu0 %1061 }
 0x17c   : > { %v1110_v16 = vsel %vm753_vm0, %v1062_v15, %v1078_v14  ;;  %v1084_v35 = vsel %vm1083_vm14, %v1078_v14, %v1080_v9  ;;  %v1262_v14 = vld [vmem:[%s3150_s9] sm:$0xff] }
 0x17d   : > { %1150 = vrot.lane.b32.xlu1 %v1110_v16, %s2487_s6 }
 0x17f   : > { %v1037_v17 = vpop.permute.xlu1 %1036  ;;  %v1009_v21 = vpop.permute.xlu0 %1008 }
 0x180   : > { %v1038_v2 = vsel %vm926_vm2, %v1035_v11, %v1037_v17 }
 0x183   : > { %v1049_v18 = vpop.permute.xlu1 %1048  ;;  %v1047_v27 = vpop.permute.xlu0 %1046 }
 0x184   : > { %v1054_v19 = vsel %vm1052_vm11, %v1049_v18, %v1051_v7  ;;  %v1107_v37 = vsel %vm753_vm0, %v1035_v11, %v1047_v27  ;;  %v1053_v61 = vsel %vm1052_vm11, %v1047_v27, %v1049_v18 }
 0x185   : > { %v1109_v20 = vsel %vm753_vm0, %v1037_v17, %v1054_v19  ;;  %v1108_v4 = vsel %vm753_vm0, %v1038_v2, %v1053_v61 }
 0x186   : > { %1148 = vrot.lane.b32.xlu1 %v1109_v20, %s2487_s6 }
 0x187   : > { %v1023_v22 = vpop.permute.xlu1 %1022  ;;  %v1025_v33 = vpop.permute.xlu0 %1024 }
 0x188   : > { %v1028_v43 = vsel %vm1026_vm15, %v1023_v22, %v1025_v33  ;;  %v1106_v50 = vsel %vm753_vm0, %v1009_v21, %v1025_v33 }
 0x18b   : > { %v1005_v25 = vpop.permute.xlu1 %1004  ;;  %v1021_v46 = vpop.permute.xlu0 %1020 }
 0x18c   : > { %v1027_v58 = vsel %vm1026_vm15, %v1021_v46, %v1023_v22 }
 0x18f   : > { %v1095_v28 = vpop.permute.xlu1 %1094  ;;  %v995_v1 = vpop.permute.xlu0 %994 }
 0x190   : > { %v1099_v29 = vsel %vm1098_vm12, %v1093_v13, %v1095_v28  ;;  %v1100_v30 = vsel %vm1098_vm12, %v1095_v28, %v1097_v5  ;;  %v997_v5 = vsel %vm947_vm9, %v2755_v12, %v995_v1  ;;  %v2817_v13 = vld [vmem:[#allocation2 + $0xc] sm:$0xf] }
 0x191   : > { %1158 = vrot.lane.b32.xlu0 %v1099_v29, %s2487_s6  ;;  %1160 = vrot.lane.b32.xlu1 %v1100_v30, %s2487_s6  ;;  %v1102_v9 = vsel %vm753_vm0, %v984_v44, %v997_v5  ;;  %v1457_v16 = vmul.f32 %v2817_v13, %v2681_v24  ;;  %v1455_v17 = vmul.f32 %v2817_v13, %v2683_v26  ;;  %v1261_v5 = vld [vmem:[%s3149_s8] sm:$0xff] }
 0x193   : > { %v1064_v34 = vpop.permute.xlu1 %1063  ;;  %v1520_v18 = vcombine.low %v1455_v17, %v1455_v17 }
 0x194   : > { %v1068_v36 = vsel %vm1067_vm13, %v1062_v15, %v1064_v34  ;;  %v1069_v52 = vsel %vm1067_vm13, %v1064_v34, %v1066_v6  ;;  %v1103_v6 = vsel %vm753_vm0, %v931_v3, %v995_v1  ;;  %v1355_v15 = vld [vmem:[%s3152_s11] sm:$0xf] }
 0x195   : > { %1144 = vrot.lane.b32.xlu0 %v1107_v37, %s2487_s6  ;;  %v1111_v38 = vsel %vm753_vm0, %v1068_v36, %v1084_v35  ;;  %v1112_v59 = vsel %vm753_vm0, %v1069_v52, %v1085_v56 }
 0x196   : > { %1152 = vrot.lane.b32.xlu1 %v1111_v38, %s2487_s6 }
 0x197   : > { %v1007_v41 = vpop.permute.xlu1 %1006 }
 0x198   : > { %v1012_v47 = vsel %vm1010_vm1, %v1007_v41, %v1009_v21  ;;  %v1011_v54 = vsel %vm1010_vm1, %v1005_v25, %v1007_v41 }
 0x199   : > { %1142 = vrot.lane.b32.xlu0 %v1106_v50, %s2487_s6  ;;  %v1105_v53 = vsel %vm753_vm0, %v1012_v47, %v1028_v43  ;;  %v1104_v62 = vsel %vm753_vm0, %v1011_v54, %v1027_v58  ;;  %v1113_v58 = vld [vmem:[%s3186_s2] sm:$0xf]  ;;  %s3187_s2 = smov 126  }
 0x19a   : > { %1140 = vrot.lane.b32.xlu1 %v1105_v53, %s2487_s6 }
 0x19b   : > { %v991_v7 = vpop.permute.xlu1 %990 }
 0x19c   : > { %v996_v49 = vsel %vm947_vm9, %v991_v7, %v2755_v12  ;;  %v1459_v12 = vmul.f32 %v2817_v13, %v2679_v23 }
 0x19d   : > { %1154 = vrot.lane.b32.xlu0 %v1112_v59, %s2487_s6  ;;  %v1101_v11 = vsel %vm753_vm0, %v930_v63, %v996_v49 }
 0x19e   : > { %1138 = vrot.lane.b32.xlu1 %v1104_v62, %s2487_s6 }
 0x1a1   : > { %1146 = vrot.lane.b32.xlu0 %v1108_v4, %s2487_s6 }
 0x1a2   : > { %1136 = vrot.lane.b32.xlu1 %v1103_v6, %s2487_s6 }
 0x1a5   : > { %1134 = vrot.lane.b32.xlu0 %v1102_v9, %s2487_s6 }
 0x1a6   : > { %1117 = vperm.xlu1 %2442, %v1114_v8   ;;  %v1348_v8 = vstv %s829_s26 }
 0x1a9   : > { %1132 = vrot.lane.b32.xlu0 %v1101_v11, %s2487_s6 }
 0x1aa   : > { %744 = vperm.xlu1 %2442, %v741_v10  }
 0x1ad   : > { %1265 = vperm.xlu0 %2441, %v1262_v14  }
 0x1ae   : > { %1568 = vrot.lane.b32.xlu1 %v1459_v12, %s2494_s4 }
 0x1b1   : > { %1358 = vperm.xlu0 %2441, %v1355_v15  }
 0x1b5   : > { %1539 = vrot.lane.b32.xlu0 %v1457_v16, %s2495_s0 }
 0x1b9   : > { %1525 = vrot.lane.b32.xlu0 %v1520_v18, %s2496_s23  ;;  %v1354_v18 = vld [vmem:[%s3151_s10] sm:$0xf] }
 0x1ea   : > { %v1157_v20 = vpop.permute.xlu0 %1156 }
 0x1ef   : > { %v1151_v19 = vpop.permute.xlu1 %1150 }
 0x1f8   : > { %v1149_v21 = vpop.permute.xlu1 %1148 }
 0x203   : > { %v1159_v22 = vpop.permute.xlu0 %1158  ;;  %v1161_v25 = vpop.permute.xlu1 %1160 }
 0x204   : > { %v1171_v27 = vsel %vm977_vm6, %v1159_v22, %v1161_v25  ;;  %v1170_v28 = vsel %vm977_vm6, %v1157_v20, %v1159_v22 }
 0x205   : > { %2382 = vmatprep.subr.msk.mxu0 %vm753_vm0, %v1171_v27 }
 0x206   : > { %2383 = vmatpush1.msk.msra.mxu0 %vm753_vm0, %v1170_v28 }
 0x207   : > { %v1145_v29 = vpop.permute.xlu0 %1144 }
 0x208   : > { %v1153_v30 = vpop.permute.xlu1 %1152 }
 0x209   : > { %v1168_v38 = vsel %vm977_vm6, %v1151_v19, %v1153_v30 }
 0x20b   : > { %v1143_v33 = vpop.permute.xlu0 %1142 }
 0x20c   : > { %v1141_v34 = vpop.permute.xlu1 %1140 }
 0x20d   : > { %v1165_v47 = vsel %vm977_vm6, %v1141_v34, %v1143_v33 }
 0x20f   : > { %v1155_v35 = vpop.permute.xlu0 %1154 }
 0x210   : > { %v1169_v36 = vsel %vm977_vm6, %v1153_v30, %v1155_v35  ;;  %v1139_v37 = vpop.permute.xlu1 %1138 }
 0x211   : > { %1212 = vmatprep.subr.mxu0 %v1169_v36  ;;  %v1164_v53 = vsel %vm977_vm6, %v1139_v37, %v1141_v34 }
 0x212   : > { %1213 = vmatpush1.msra.mxu0 %v1168_v38 }
 0x213   : > { %v1147_v41 = vpop.permute.xlu0 %1146 }
 0x214   : > { %v1167_v43 = vsel %vm977_vm6, %v1147_v41, %v1149_v21  ;;  %v1166_v46 = vsel %vm977_vm6, %v1145_v29, %v1147_v41  ;;  %v1137_v50 = vpop.permute.xlu1 %1136 }
 0x215   : > { %1214 = vmatprep.subr.mxu0 %v1167_v43 }
 0x216   : > { %1215 = vmatpush1.msra.mxu0 %v1166_v46 }
 0x217   : > { %1216 = vmatprep.subr.mxu0 %v1165_v47  ;;  %v1135_v52 = vpop.permute.xlu0 %1134 }
 0x218   : > { %1217 = vmatpush1.msra.mxu0 %v1164_v53  ;;  %v1163_v54 = vsel %vm977_vm6, %v1135_v52, %v1137_v50 }
 0x219   : > { %1218 = vmatprep.subr.mxu0 %v1163_v54 }
 0x21b   : > { %v1133_v56 = vpop.permute.xlu0 %1132 }
 0x21c   : > { %v1162_v59 = vsel %vm977_vm6, %v1133_v56, %v1135_v52 }
 0x21d   : > { %1219 = vmatpush1.msra.mxu0 %v1162_v59 }
 0x21e   : > { %2384 = vmatmul.mubr.msk.f32.vlgmr.msra.gmra.mxu0 %vm1180_vm4, %v1113_v58 }
 0x21f   : > { %1811 = vmatprep.mubr.f32.mxu0 %v2485_v0 }
 0x221   : > { %v1118_v62 = vpop.permute.xlu1 %1117 }
 0x225   : > { %v745_v9 = vpop.permute.xlu1 %744 }
 0x226   : > { %v827_v14 = vadd.f32 %v2693_v32, %v745_v9  ;;  %v825_v15 = vadd.f32 %v2691_v31, %v745_v9  ;;  %v1549_v31 = vcombine.low %v2817_v13, %v2817_v13 }
 0x228   : > { %v1266_v6 = vpop.permute.xlu0 %1265  ;;  %1554 = vrot.lane.b32.xlu1 %v1549_v31, %s2493_s30 }
 0x22c   : > { %v1359_v32 = vpop.permute.xlu0 %1358 }
 0x230   : > { %v1540_v59 = vpop.permute.xlu0 %1539 }
 0x2de   : > { %v1254_v61 = vpop.f32.mrf.mxu0 }
 0x2df   : > { %v1255_v63 = vadd.f32 %v1254_v61, %v1118_v62  ;;  %v1526_v61 = vpop.permute.xlu0 %1525 }
 0x2e0   : > { %v1256_v1 = vpop.f32.mrf.mxu0 }
 0x2e1   : > { %v1257_v2 = vadd.f32 %v1256_v1, %v1118_v62  ;;  %v1259_v4 = vmax.f32 %v1255_v63, 0.0  ;;  %v1569_v62 = vpop.permute.xlu1 %1568 }
 0x2e3   : > { %v1260_v3 = vmax.f32 %v1257_v2, 0.0 }
 0x2e5   : > { %2385 = vmatprep.subr.msk.mxu1 %vm753_vm0, %v1260_v3  ;;  %v1555_v1 = vpop.permute.xlu1 %1554 }
 0x2e6   : > { %2386 = vmatpush1.msk.msra.mxu1 %vm753_vm0, %v1259_v4 }
 0x2e7   : > { %2387 = vmatmul.mubr.msk.f32.vlgmr.msra.gmra.mxu1 %vm749_vm3, %v1261_v5 }
 0x2e8   : > { %1429 = vmatprep.mubr.f32.mxu1 %v2485_v0 }
 0x3a7   : > { %v1343_v7 = vpop.f32.mrf.mxu1 }
 0x3a8   : > { %v1344_v44 = vadd.f32 %v1343_v7, %v1266_v6 }
 0x3a9   : > { %v1345_v49 = vpop.f32.mrf.mxu1 }
 0x3aa   : > { %v1346_v10 = vadd.f32 %v1345_v49, %v1266_v6  ;;  %v1349_v11 = vmul.f32 %v1348_v8, %v1344_v44 }
 0x3ac   : > { %v1350_v12 = vmul.f32 %v1348_v8, %v1346_v10  ;;  %v2862_v17 = vadd.f32 %v1349_v11, %v825_v15 }
 0x3ae   : > { %v2860_v16 = vadd.f32 %v1350_v12, %v827_v14 }
 0x3b0   : > { %1395 = vmatprep.subr.mxu1 %v2860_v16 }
 0x3b1   : > { %1396 = vmatpush1.msra.mxu1 %v2862_v17 }
 0x3b2   : > { %2389 = vmatmul.mubr.msk.f32.vlgmr.msra.gmra.mxu1 %vm1361_vm5, %v1354_v18 }
 0x3b3   : > { %1722 = vmatprep.mubr.f32.mxu1 %v2485_v0 }
 0x472   : > { %v1431_v19 = vpop.f32.mrf.mxu1 }
 0x473   : > { %v1432_v20 = vadd.f32 %v1431_v19, %v1359_v32 }
 0x474   : > { %v1433_v21 = vpop.f32.mrf.mxu1 }
 0x475   : > { %v1434_v22 = vadd.f32 %v1433_v21, %v1359_v32  ;;  %v1436_v25 = vmax.f32 %v1432_v20, 0.0 }
 0x477   : > { %v1437_v27 = vmax.f32 %v1434_v22, 0.0  ;;  %v2453_v35 = vcombine.low %v1436_v25, %v1436_v25 }
 0x479   : > { %v1440_v28 = vcombine.low %v1436_v25, %v1437_v27  ;;  %v2454_v38 = vcombine.low %v1437_v27, %v1437_v27 }
 0x47b   : > { %1442 = vst [vmem:[#allocation2 + $0x4] sm:$0xff] %v1440_v28  ;;  %1552 = vrot.lane.b32.xlu0 %v1440_v28, %s2493_s30  ;;  %v1456_v29 = vmul.f32 %v1440_v28, %v2703_v42  ;;  %v1458_v33 = vmul.f32 %v1440_v28, %v2698_v40  ;;  %v1454_v37 = vmul.f32 %v1440_v28, %v2714_v48 }
 0x47d   : > { %v1563_v36 = vcombine.high %v1458_v33, %v1458_v33  ;;  %v1519_v41 = vcombine.low %v1454_v37, %v1454_v37  ;;  %v1534_v54 = vcombine.high %v1456_v29, %v1456_v29 }
 0x47f   : > { %1509 = vrot.lane.b32.xlu0 %v1440_v28, %s3170_s29 }
 0x482   : > { %v2877_v30 = vld [vmem:[#allocation2] sm:$0xff]  ;;  %v2879_v13 = vld [vmem:[#allocation2 + $0x8] sm:$0xf] }
 0x483   : > { %1469 = vrot.lane.b32.xlu1 %v2877_v30, %s3168_s27  ;;  %1535 = vrot.lane.b32.xlu0 %v1456_v29, %s2495_s0  ;;  %v1448_v34 = vmul.f32 %v2879_v13, %v2710_v45  ;;  %v1450_v43 = vmul.f32 %v2879_v13, %v2720_v51  ;;  %v1449_v46 = vmul.f32 %v2877_v30, %v2731_v57 }
 0x484   : > { %v1447_v52 = vmul.f32 %v2877_v30, %v2738_v60  ;;  %v1466_v53 = vcombine.low %v2879_v13, %v2879_v13  ;;  %v1465_v58 = vcombine.low %v2877_v30, %v2877_v30 }
 0x485   : > { %v1495_v47 = vcombine.low %v1450_v43, %v1450_v43  ;;  %v1494_v50 = vcombine.low %v1449_v46, %v1449_v46 }
 0x486   : > { %v1480_v56 = vcombine.high %v1447_v52, %v1447_v52 }
 0x487   : > { %1564 = vrot.lane.b32.xlu1 %v1458_v33, %s2494_s4  ;;  %1485 = vrot.lane.b32.xlu0 %v1448_v34, %s3187_s2 }
 0x48b   : > { %1550 = vrot.lane.b32.xlu1 %v2453_v35, %s2493_s30  ;;  %1566 = vrot.lane.b32.xlu0 %v1563_v36, %s2494_s4 }
 0x48f   : > { %1511 = vrot.lane.b32.xlu1 %v2454_v38, %s3170_s29  ;;  %1521 = vrot.lane.b32.xlu0 %v1519_v41, %s2496_s23  ;;  %v1445_v38 = vmul.f32 %v2877_v30, %v2785_v55  ;;  %s3189_s29 = smov 111  }
 0x491   : > { %v1461_v30 = vcombine.high %v1445_v38, %v1445_v38 }
 0x493   : > { %1523 = vrot.lane.b32.xlu1 %v1454_v37, %s2496_s23  ;;  %1500 = vrot.lane.b32.xlu0 %v1495_v47, %s3188_s24 }
 0x497   : > { %1498 = vrot.lane.b32.xlu1 %v1449_v46, %s3188_s24  ;;  %1496 = vrot.lane.b32.xlu0 %v1494_v50, %s3188_s24 }
 0x49b   : > { %1481 = vrot.lane.b32.xlu1 %v1447_v52, %s3187_s2  ;;  %1471 = vrot.lane.b32.xlu0 %v1466_v53, %s3168_s27 }
 0x49f   : > { %1537 = vrot.lane.b32.xlu1 %v1534_v54, %s2495_s0 }
 0x4a3   : > { %1483 = vrot.lane.b32.xlu1 %v1480_v56, %s3187_s2 }
 0x4a7   : > { %1467 = vrot.lane.b32.xlu1 %v1465_v58, %s3168_s27 }
 0x4ed   : > { %v1553_v63 = vpop.permute.xlu0 %1552 }
 0x4ee   : > { %v1557_v25 = vsel %vm1083_vm14, %v1553_v63, %v1555_v1 }
 0x4f1   : > { %v1510_v2 = vpop.permute.xlu0 %1509 }
 0x4f5   : > { %v1470_v3 = vpop.permute.xlu1 %1469  ;;  %v1536_v4 = vpop.permute.xlu0 %1535 }
 0x4f9   : > { %v1565_v5 = vpop.permute.xlu1 %1564  ;;  %v1486_v6 = vpop.permute.xlu0 %1485 }
 0x4fa   : > { %1627 = vrot.lane.b32.xlu0 %v1565_v5, %s2487_s6 }
 0x4fd   : > { %v1551_v7 = vpop.permute.xlu1 %1550  ;;  %v1567_v44 = vpop.permute.xlu0 %1566 }
 0x4fe   : > { %v1581_v8 = vsel %vm753_vm0, %v1536_v4, %v1551_v7  ;;  %v1570_v9 = vsel %vm1098_vm12, %v1565_v5, %v1567_v44  ;;  %v1571_v19 = vsel %vm1098_vm12, %v1567_v44, %v1569_v62  ;;  %v1556_v27 = vsel %vm1083_vm14, %v1551_v7, %v1553_v63 }
 0x4ff   : > { %1621 = vrot.lane.b32.xlu1 %v1581_v8, %s2487_s6  ;;  %1629 = vrot.lane.b32.xlu0 %v1570_v9, %s2487_s6  ;;  %v1446_v62 = vmul.f32 %v2879_v13, %v2773_v39  ;;  %v1825_v13 = vld [vmem:[%s3158_s17] sm:$0xf] }
 0x501   : > { %v1512_v49 = vpop.permute.xlu1 %1511  ;;  %v1522_v10 = vpop.permute.xlu0 %1521 }
 0x502   : > { %v1578_v11 = vsel %vm753_vm0, %v1510_v2, %v1522_v10  ;;  %v1513_v41 = vsel %vm926_vm2, %v1510_v2, %v1512_v49  ;;  %v1585_v2 = vld [vmem:[%s3154_s13] sm:$0xf] }
 0x503   : > { %1615 = vrot.lane.b32.xlu0 %v1578_v11, %s2487_s6 }
 0x505   : > { %v1524_v14 = vpop.permute.xlu1 %1523  ;;  %v1501_v12 = vpop.permute.xlu0 %1500 }
 0x506   : > { %v1528_v15 = vsel %vm1052_vm11, %v1524_v14, %v1526_v61  ;;  %v1577_v18 = vsel %vm753_vm0, %v1486_v6, %v1501_v12  ;;  %v1527_v35 = vsel %vm1052_vm11, %v1522_v10, %v1524_v14 }
 0x507   : > { %v1580_v31 = vsel %vm753_vm0, %v1512_v49, %v1528_v15  ;;  %1613 = vrot.lane.b32.xlu0 %v1577_v18, %s2487_s6  ;;  %v1579_v47 = vsel %vm753_vm0, %v1513_v41, %v1527_v35 }
 0x508   : > { %1619 = vrot.lane.b32.xlu1 %v1580_v31, %s2487_s6 }
 0x509   : > { %v1499_v32 = vpop.permute.xlu1 %1498  ;;  %v1497_v21 = vpop.permute.xlu0 %1496 }
 0x50a   : > { %v1503_v43 = vsel %vm1026_vm15, %v1499_v32, %v1501_v12  ;;  %v1502_v56 = vsel %vm1026_vm15, %v1497_v21, %v1499_v32 }
 0x50c   : > { %1631 = vrot.lane.b32.xlu1 %v1571_v19, %s2487_s6 }
 0x50d   : > { %v1482_v20 = vpop.permute.xlu1 %1481  ;;  %v1472_v37 = vpop.permute.xlu0 %1471 }
 0x50e   : > { %v1474_v53 = vsel %vm947_vm9, %v1470_v3, %v1472_v37  ;;  %v1574_v63 = vsel %vm753_vm0, %v1446_v62, %v1472_v37 }
 0x511   : > { %v1538_v22 = vpop.permute.xlu1 %1537 }
 0x512   : > { %v1541_v28 = vsel %vm1067_vm13, %v1536_v4, %v1538_v22  ;;  %v1542_v29 = vsel %vm1067_vm13, %v1538_v22, %v1540_v59  ;;  %v1573_v59 = vsel %vm753_vm0, %v1461_v30, %v1474_v53  ;;  %v2965_v4 = vld [vmem:[#allocation2 + $0xc] sm:$0xf] }
 0x513   : > { %v1582_v33 = vsel %vm753_vm0, %v1541_v28, %v1556_v27  ;;  %v1583_v34 = vsel %vm753_vm0, %v1542_v29, %v1557_v25  ;;  %v1928_v5 = vmul.f32 %v2965_v4, %v2679_v23  ;;  %v1924_v7 = vmul.f32 %v2965_v4, %v2683_v26 }
 0x514   : > { %1623 = vrot.lane.b32.xlu1 %v1582_v33, %s2487_s6  ;;  %1625 = vrot.lane.b32.xlu0 %v1583_v34, %s2487_s6 }
 0x515   : > { %v1484_v36 = vpop.permute.xlu1 %1483  ;;  %v1989_v44 = vcombine.low %v1924_v7, %v1924_v7 }
 0x516   : > { %v1488_v46 = vsel %vm1010_vm1, %v1484_v36, %v1486_v6  ;;  %v1487_v52 = vsel %vm1010_vm1, %v1482_v20, %v1484_v36  ;;  %v1926_v6 = vmul.f32 %v2965_v4, %v2681_v24  ;;  %v1584_v36 = vld [vmem:[%s3153_s12] sm:$0xf] }
 0x517   : > { %v1576_v50 = vsel %vm753_vm0, %v1488_v46, %v1503_v43  ;;  %v1575_v58 = vsel %vm753_vm0, %v1487_v52, %v1502_v56  ;;  %v1731_v52 = vld [vmem:[%s3155_s14] sm:$0xff]  ;;  %v1818_v56 = vstv %s2388_s1  ;;  %s2396_s1 = sld [smem:[#allocation3 + $0x2]] }
 0x518   : > { %1617 = vrot.lane.b32.xlu0 %v1579_v47, %s2487_s6  ;;  %1611 = vrot.lane.b32.xlu1 %v1576_v50, %s2487_s6 }
 0x519   : > { %v1468_v54 = vpop.permute.xlu1 %1467 }
 0x51a   : > { %v1473_v61 = vsel %vm947_vm9, %v1468_v54, %v1470_v3  ;;  %v1732_v3 = vld [vmem:[%s3156_s15] sm:$0xff] }
 0x51b   : > { %v1572_v1 = vsel %vm753_vm0, %v1445_v38, %v1473_v61 }
 0x51c   : > { %1609 = vrot.lane.b32.xlu1 %v1575_v58, %s2487_s6  ;;  %1605 = vrot.lane.b32.xlu0 %v1573_v59, %s2487_s6 }
 0x520   : > { %1607 = vrot.lane.b32.xlu1 %v1574_v63, %s2487_s6  ;;  %1603 = vrot.lane.b32.xlu0 %v1572_v1, %s2487_s6 }
 0x524   : > { %1588 = vperm.xlu1 %2442, %v1585_v2   ;;  %1735 = vperm.xlu0 %2441, %v1732_v3   ;;  %v1824_v2 = vld [vmem:[%s3157_s16] sm:$0xf]  ;;  %v2018_v3 = vcombine.low %v2965_v4, %v2965_v4 }
 0x528   : > { %1828 = vperm.xlu1 %2442, %v1825_v13   ;;  %2037 = vrot.lane.b32.xlu0 %v1928_v5, %s2494_s4 }
 0x52c   : > { %2008 = vrot.lane.b32.xlu1 %v1926_v6, %s2495_s0  ;;  %2023 = vrot.lane.b32.xlu0 %v2018_v3, %s2493_s30 }
 0x530   : > { %1994 = vrot.lane.b32.xlu1 %v1989_v44, %s2496_s23 }
 0x56c   : > { %v1628_v8 = vpop.permute.xlu0 %1627 }
 0x571   : > { %v1622_v9 = vpop.permute.xlu1 %1621  ;;  %v1630_v49 = vpop.permute.xlu0 %1629 }
 0x572   : > { %v1641_v12 = vsel %vm977_vm6, %v1628_v8, %v1630_v49 }
 0x575   : > { %v1616_v11 = vpop.permute.xlu0 %1615 }
 0x579   : > { %v1614_v24 = vpop.permute.xlu0 %1613 }
 0x57a   : > { %v1620_v10 = vpop.permute.xlu1 %1619 }
 0x57e   : > { %v1632_v23 = vpop.permute.xlu1 %1631 }
 0x57f   : > { %v1642_v14 = vsel %vm977_vm6, %v1630_v49, %v1632_v23 }
 0x580   : > { %2390 = vmatprep.subr.msk.mxu1 %vm753_vm0, %v1642_v14 }
 0x581   : > { %2391 = vmatpush1.msk.msra.mxu1 %vm753_vm0, %v1641_v12 }
 0x586   : > { %v1624_v26 = vpop.permute.xlu1 %1623  ;;  %v1626_v15 = vpop.permute.xlu0 %1625 }
 0x587   : > { %v1639_v18 = vsel %vm977_vm6, %v1622_v9, %v1624_v26  ;;  %v1640_v31 = vsel %vm977_vm6, %v1624_v26, %v1626_v15 }
 0x588   : > { %1682 = vmatprep.subr.mxu1 %v1640_v31 }
 0x589   : > { %1683 = vmatpush1.msra.mxu1 %v1639_v18 }
 0x58a   : > { %v1612_v32 = vpop.permute.xlu1 %1611  ;;  %v1618_v19 = vpop.permute.xlu0 %1617 }
 0x58b   : > { %v1637_v20 = vsel %vm977_vm6, %v1616_v11, %v1618_v19  ;;  %v1638_v21 = vsel %vm977_vm6, %v1618_v19, %v1620_v10  ;;  %v1636_v22 = vsel %vm977_vm6, %v1612_v32, %v1614_v24 }
 0x58c   : > { %1684 = vmatprep.subr.mxu1 %v1638_v21 }
 0x58d   : > { %1685 = vmatpush1.msra.mxu1 %v1637_v20 }
 0x58e   : > { %v1610_v25 = vpop.permute.xlu1 %1609  ;;  %1686 = vmatprep.subr.mxu1 %v1636_v22  ;;  %v1606_v27 = vpop.permute.xlu0 %1605 }
 0x58f   : > { %v1635_v28 = vsel %vm977_vm6, %v1610_v25, %v1612_v32 }
 0x590   : > { %1687 = vmatpush1.msra.mxu1 %v1635_v28 }
 0x592   : > { %v1608_v29 = vpop.permute.xlu1 %1607  ;;  %v1604_v33 = vpop.permute.xlu0 %1603 }
 0x593   : > { %v1633_v34 = vsel %vm977_vm6, %v1604_v33, %v1606_v27  ;;  %v1634_v35 = vsel %vm977_vm6, %v1606_v27, %v1608_v29 }
 0x594   : > { %1688 = vmatprep.subr.mxu1 %v1634_v35 }
 0x595   : > { %1689 = vmatpush1.msra.mxu1 %v1633_v34 }
 0x596   : > { %2392 = vmatmul.mubr.msk.f32.vlgmr.msra.gmra.mxu1 %vm1180_vm4, %v1584_v36 }
 0x597   : > { %2280 = vmatprep.mubr.f32.mxu1 %v2485_v0 }
 0x59f   : > { %v1589_v38 = vpop.permute.xlu1 %1588  ;;  %v1736_v53 = vpop.permute.xlu0 %1735 }
 0x5a3   : > { %v2038_v32 = vpop.permute.xlu0 %2037 }
 0x5a7   : > { %v2024_v20 = vpop.permute.xlu0 %2023 }
 0x656   : > { %v1724_v37 = vpop.f32.mrf.mxu1 }
 0x657   : > { %v1725_v41 = vadd.f32 %v1724_v37, %v1589_v38 }
 0x658   : > { %v1726_v43 = vpop.f32.mrf.mxu1 }
 0x659   : > { %v1727_v46 = vadd.f32 %v1726_v43, %v1589_v38  ;;  %v1729_v50 = vmax.f32 %v1725_v41, 0.0 }
 0x65b   : > { %v1730_v47 = vmax.f32 %v1727_v46, 0.0 }
 0x65d   : > { %2393 = vmatprep.subr.msk.mxu0 %vm753_vm0, %v1730_v47 }
 0x65e   : > { %2394 = vmatpush1.msk.msra.mxu0 %vm753_vm0, %v1729_v50 }
 0x65f   : > { %2395 = vmatmul.mubr.msk.f32.vlgmr.msra.gmra.mxu0 %vm749_vm3, %v1731_v52 }
 0x660   : > { %1898 = vmatprep.mubr.f32.mxu0 %v2485_v0 }
 0x71f   : > { %v1813_v54 = vpop.f32.mrf.mxu0 }
 0x720   : > { %v1814_v30 = vadd.f32 %v1813_v54, %v1736_v53 }
 0x721   : > { %v1815_v58 = vpop.f32.mrf.mxu0 }
 0x722   : > { %v1816_v59 = vadd.f32 %v1815_v58, %v1736_v53  ;;  %v1819_v61 = vmul.f32 %v1818_v56, %v1814_v30 }
 0x724   : > { %v1820_v62 = vmul.f32 %v1818_v56, %v1816_v59  ;;  %v3007_v1 = vadd.f32 %v1819_v61, %v2862_v17 }
 0x726   : > { %v3004_v63 = vadd.f32 %v1820_v62, %v2860_v16  ;;  %v1829_v16 = vpop.permute.xlu1 %1828 }
 0x728   : > { %1864 = vmatprep.subr.mxu0 %v3004_v63 }
 0x729   : > { %1865 = vmatpush1.msra.mxu0 %v3007_v1 }
 0x72a   : > { %2397 = vmatmul.mubr.msk.f32.vlgmr.msra.gmra.mxu0 %vm1361_vm5, %v1824_v2  ;;  %v2009_v31 = vpop.permute.xlu1 %2008 }
 0x72b   : > { %2191 = vmatprep.mubr.f32.mxu0 %v2485_v0 }
 0x7ea   : > { %v1900_v17 = vpop.f32.mrf.mxu0 }
 0x7eb   : > { %v1901_v13 = vadd.f32 %v1900_v17, %v1829_v16 }
 0x7ec   : > { %v1902_v5 = vpop.f32.mrf.mxu0 }
 0x7ed   : > { %v1903_v6 = vadd.f32 %v1902_v5, %v1829_v16  ;;  %v1905_v7 = vmax.f32 %v1901_v13, 0.0 }
 0x7ef   : > { %v1906_v44 = vmax.f32 %v1903_v6, 0.0 }
 0x7f1   : > { %v1909_v8 = vcombine.low %v1905_v7, %v1906_v44  ;;  %v2456_v14 = vcombine.low %v1906_v44, %v1906_v44 }
 0x7f3   : > { %1911 = vst [vmem:[#allocation2 + $0x4] sm:$0xff] %v1909_v8  ;;  %2021 = vrot.lane.b32.xlu1 %v1909_v8, %s2493_s30  ;;  %v1925_v0 = vmul.f32 %v1909_v8, %v2703_v42  ;;  %v1927_v49 = vmul.f32 %v1909_v8, %v2698_v40  ;;  %v2455_v42 = vcombine.low %v1905_v7, %v1905_v7 }
 0x7f4   : > { %v1923_v23 = vmul.f32 %v1909_v8, %v2714_v48 }
 0x7f5   : > { %v2032_v11 = vcombine.high %v1927_v49, %v1927_v49 }
 0x7f6   : > { %v1988_v12 = vcombine.low %v1923_v23, %v1923_v23 }
 0x7f7   : > { %1978 = vrot.lane.b32.xlu1 %v1909_v8, %s3189_s29 }
 0x7fa   : > { %v3022_v9 = vld [vmem:[#allocation2] sm:$0xff]  ;;  %v3024_v4 = vld [vmem:[#allocation2 + $0x8] sm:$0xf] }
 0x7fb   : > { %1938 = vrot.lane.b32.xlu0 %v3022_v9, %s3190_s25  ;;  %2004 = vrot.lane.b32.xlu1 %v1925_v0, %s2495_s0  ;;  %v1917_v10 = vmul.f32 %v3024_v4, %v2710_v45  ;;  %v1919_v40 = vmul.f32 %v3024_v4, %v2720_v51  ;;  %v1918_v45 = vmul.f32 %v3022_v9, %v2731_v57 }
 0x7fc   : > { %v1916_v51 = vmul.f32 %v3022_v9, %v2738_v60  ;;  %v1935_v26 = vcombine.low %v3024_v4, %v3024_v4  ;;  %v2003_v57 = vcombine.high %v1925_v0, %v1925_v0  ;;  %v1934_v18 = vcombine.low %v3022_v9, %v3022_v9  ;;  %v1995_v60 = vpop.permute.xlu1 %1994 }
 0x7fd   : > { %v1964_v24 = vcombine.low %v1919_v40, %v1919_v40  ;;  %v1963_v48 = vcombine.low %v1918_v45, %v1918_v45  ;;  %v1914_v5 = vmul.f32 %v3022_v9, %v2785_v55 }
 0x7fe   : > { %v1949_v15 = vcombine.high %v1916_v51, %v1916_v51 }
 0x7ff   : > { %2033 = vrot.lane.b32.xlu0 %v1927_v49, %s2494_s4  ;;  %1954 = vrot.lane.b32.xlu1 %v1917_v10, %s3187_s2  ;;  %v1930_v55 = vcombine.high %v1914_v5, %v1914_v5 }
 0x803   : > { %2019 = vrot.lane.b32.xlu0 %v2455_v42, %s2493_s30  ;;  %2035 = vrot.lane.b32.xlu1 %v2032_v11, %s2494_s4 }
 0x807   : > { %1980 = vrot.lane.b32.xlu0 %v2456_v14, %s3189_s29  ;;  %1990 = vrot.lane.b32.xlu1 %v1988_v12, %s2496_s23  ;;  %v1915_v12 = vmul.f32 %v3024_v4, %v2773_v39 }
 0x80b   : > { %1992 = vrot.lane.b32.xlu0 %v1923_v23, %s2496_s23  ;;  %1969 = vrot.lane.b32.xlu1 %v1964_v24, %s3188_s24  ;;  %v2054_v24 = vld [vmem:[%s3160_s19] sm:$0xf] }
 0x80f   : > { %1967 = vrot.lane.b32.xlu0 %v1918_v45, %s3188_s24  ;;  %1965 = vrot.lane.b32.xlu1 %v1963_v48, %s3188_s24  ;;  %v2201_v48 = vld [vmem:[%s3162_s21] sm:$0xff] }
 0x813   : > { %1950 = vrot.lane.b32.xlu0 %v1916_v51, %s3187_s2  ;;  %1940 = vrot.lane.b32.xlu1 %v1935_v26, %s3190_s25 }
 0x817   : > { %2006 = vrot.lane.b32.xlu0 %v2003_v57, %s2495_s0 }
 0x81b   : > { %1952 = vrot.lane.b32.xlu0 %v1949_v15, %s3187_s2 }
 0x81f   : > { %1936 = vrot.lane.b32.xlu0 %v1934_v18, %s3190_s25  ;;  %s697_s25 = scalar_lea.vmem %s3163_s22, %s2407_s5 }
 0x865   : > { %v2022_v19 = vpop.permute.xlu1 %2021 }
 0x866   : > { %v2026_v58 = vsel %vm1083_vm14, %v2022_v19, %v2024_v20 }
 0x869   : > { %v1979_v21 = vpop.permute.xlu1 %1978 }
 0x86d   : > { %v1939_v22 = vpop.permute.xlu0 %1938  ;;  %v2005_v25 = vpop.permute.xlu1 %2004 }
 0x871   : > { %v2034_v27 = vpop.permute.xlu0 %2033  ;;  %v1955_v28 = vpop.permute.xlu1 %1954 }
 0x872   : > { %2096 = vrot.lane.b32.xlu1 %v2034_v27, %s2487_s6 }
 0x875   : > { %v2020_v29 = vpop.permute.xlu0 %2019  ;;  %v2036_v33 = vpop.permute.xlu1 %2035 }
 0x876   : > { %v2050_v34 = vsel %vm753_vm0, %v2005_v25, %v2020_v29  ;;  %v2039_v35 = vsel %vm1098_vm12, %v2034_v27, %v2036_v33  ;;  %v2040_v53 = vsel %vm1098_vm12, %v2036_v33, %v2038_v32  ;;  %v2025_v59 = vsel %vm1083_vm14, %v2020_v29, %v2022_v19 }
 0x877   : > { %2090 = vrot.lane.b32.xlu0 %v2050_v34, %s2487_s6  ;;  %2098 = vrot.lane.b32.xlu1 %v2039_v35, %s2487_s6 }
 0x879   : > { %v1981_v36 = vpop.permute.xlu0 %1980  ;;  %v1991_v37 = vpop.permute.xlu1 %1990 }
 0x87a   : > { %v2047_v38 = vsel %vm753_vm0, %v1979_v21, %v1991_v37  ;;  %v1982_v6 = vsel %vm926_vm2, %v1979_v21, %v1981_v36 }
 0x87b   : > { %2084 = vrot.lane.b32.xlu1 %v2047_v38, %s2487_s6 }
 0x87d   : > { %v1993_v41 = vpop.permute.xlu0 %1992  ;;  %v1970_v43 = vpop.permute.xlu1 %1969 }
 0x87e   : > { %v1997_v46 = vsel %vm1052_vm11, %v1993_v41, %v1995_v60  ;;  %v2046_v47 = vsel %vm753_vm0, %v1955_v28, %v1970_v43  ;;  %v1996_v16 = vsel %vm1052_vm11, %v1991_v37, %v1993_v41 }
 0x87f   : > { %v2049_v50 = vsel %vm753_vm0, %v1981_v36, %v1997_v46  ;;  %2082 = vrot.lane.b32.xlu1 %v2046_v47, %s2487_s6  ;;  %v2048_v8 = vsel %vm753_vm0, %v1982_v6, %v1996_v16 }
 0x880   : > { %2088 = vrot.lane.b32.xlu0 %v2049_v50, %s2487_s6 }
 0x881   : > { %v1968_v52 = vpop.permute.xlu0 %1967  ;;  %v1966_v30 = vpop.permute.xlu1 %1965 }
 0x882   : > { %v1972_v7 = vsel %vm1026_vm15, %v1968_v52, %v1970_v43  ;;  %v1971_v9 = vsel %vm1026_vm15, %v1966_v30, %v1968_v52  ;;  %v2053_v43 = vld [vmem:[%s3159_s18] sm:$0xf] }
 0x884   : > { %2100 = vrot.lane.b32.xlu0 %v2040_v53, %s2487_s6 }
 0x885   : > { %v1951_v54 = vpop.permute.xlu0 %1950  ;;  %v1941_v17 = vpop.permute.xlu1 %1940 }
 0x886   : > { %v1943_v49 = vsel %vm947_vm9, %v1939_v22, %v1941_v17  ;;  %v2043_v40 = vsel %vm753_vm0, %v1915_v12, %v1941_v17 }
 0x887   : > { %v2042_v42 = vsel %vm753_vm0, %v1930_v55, %v1943_v49 }
 0x889   : > { %v2007_v56 = vpop.permute.xlu0 %2006 }
 0x88a   : > { %v2010_v61 = vsel %vm1067_vm13, %v2005_v25, %v2007_v56  ;;  %v2011_v62 = vsel %vm1067_vm13, %v2007_v56, %v2009_v31  ;;  %v2200_v56 = vld [vmem:[%s3161_s20] sm:$0xff] }
 0x88b   : > { %v2052_v2 = vsel %vm753_vm0, %v2011_v62, %v2026_v58  ;;  %v2051_v3 = vsel %vm753_vm0, %v2010_v61, %v2025_v59  ;;  %v2287_v61 = vstv %s2396_s1 }
 0x88c   : > { %2094 = vrot.lane.b32.xlu1 %v2052_v2, %s2487_s6  ;;  %2092 = vrot.lane.b32.xlu0 %v2051_v3, %s2487_s6 }
 0x88d   : > { %v1953_v13 = vpop.permute.xlu0 %1952 }
 0x88e   : > { %v1957_v44 = vsel %vm1010_vm1, %v1953_v13, %v1955_v28  ;;  %v1956_v10 = vsel %vm1010_vm1, %v1951_v54, %v1953_v13 }
 0x88f   : > { %v2045_v0 = vsel %vm753_vm0, %v1957_v44, %v1972_v7  ;;  %v2044_v23 = vsel %vm753_vm0, %v1956_v10, %v1971_v9 }
 0x890   : > { %2086 = vrot.lane.b32.xlu1 %v2048_v8, %s2487_s6  ;;  %2080 = vrot.lane.b32.xlu0 %v2045_v0, %s2487_s6 }
 0x891   : > { %v1937_v11 = vpop.permute.xlu0 %1936 }
 0x892   : > { %v1942_v14 = vsel %vm947_vm9, %v1937_v11, %v1939_v22 }
 0x893   : > { %v2041_v45 = vsel %vm753_vm0, %v1914_v5, %v1942_v14 }
 0x894   : > { %2074 = vrot.lane.b32.xlu1 %v2042_v42, %s2487_s6  ;;  %2078 = vrot.lane.b32.xlu0 %v2044_v23, %s2487_s6 }
 0x898   : > { %2076 = vrot.lane.b32.xlu0 %v2043_v40, %s2487_s6  ;;  %2072 = vrot.lane.b32.xlu1 %v2041_v45, %s2487_s6 }
 0x89c   : > { %2057 = vperm.xlu0 %2441, %v2054_v24   ;;  %2204 = vperm.xlu1 %2442, %v2201_v48  }
 0x8e4   : > { %v2097_v51 = vpop.permute.xlu1 %2096 }
 0x8e9   : > { %v2091_v39 = vpop.permute.xlu0 %2090  ;;  %v2099_v4 = vpop.permute.xlu1 %2098 }
 0x8ea   : > { %v2110_v31 = vsel %vm977_vm6, %v2097_v51, %v2099_v4 }
 0x8ed   : > { %v2085_v57 = vpop.permute.xlu1 %2084 }
 0x8f1   : > { %v2083_v60 = vpop.permute.xlu1 %2082 }
 0x8f2   : > { %v2089_v26 = vpop.permute.xlu0 %2088 }
 0x8f6   : > { %v2101_v15 = vpop.permute.xlu0 %2100 }
 0x8f7   : > { %v2111_v18 = vsel %vm977_vm6, %v2099_v4, %v2101_v15 }
 0x8f8   : > { %2398 = vmatprep.subr.msk.mxu0 %vm753_vm0, %v2111_v18 }
 0x8f9   : > { %2399 = vmatpush1.msk.msra.mxu0 %vm753_vm0, %v2110_v31 }
 0x8fe   : > { %v2095_v32 = vpop.permute.xlu1 %2094  ;;  %v2093_v19 = vpop.permute.xlu0 %2092 }
 0x8ff   : > { %v2108_v20 = vsel %vm977_vm6, %v2091_v39, %v2093_v19  ;;  %v2109_v21 = vsel %vm977_vm6, %v2093_v19, %v2095_v32 }
 0x900   : > { %2151 = vmatprep.subr.mxu0 %v2109_v21 }
 0x901   : > { %2152 = vmatpush1.msra.mxu0 %v2108_v20 }
 0x902   : > { %v2087_v22 = vpop.permute.xlu1 %2086  ;;  %v2081_v25 = vpop.permute.xlu0 %2080 }
 0x903   : > { %v2106_v27 = vsel %vm977_vm6, %v2085_v57, %v2087_v22  ;;  %v2107_v28 = vsel %vm977_vm6, %v2087_v22, %v2089_v26  ;;  %v2105_v29 = vsel %vm977_vm6, %v2081_v25, %v2083_v60 }
 0x904   : > { %2153 = vmatprep.subr.mxu0 %v2107_v28 }
 0x905   : > { %2154 = vmatpush1.msra.mxu0 %v2106_v27 }
 0x906   : > { %v2075_v33 = vpop.permute.xlu1 %2074  ;;  %2155 = vmatprep.subr.mxu0 %v2105_v29  ;;  %v2079_v34 = vpop.permute.xlu0 %2078 }
 0x907   : > { %v2104_v35 = vsel %vm977_vm6, %v2079_v34, %v2081_v25 }
 0x908   : > { %2156 = vmatpush1.msra.mxu0 %v2104_v35 }
 0x90a   : > { %v2073_v36 = vpop.permute.xlu1 %2072  ;;  %v2077_v37 = vpop.permute.xlu0 %2076 }
 0x90b   : > { %v2102_v38 = vsel %vm977_vm6, %v2073_v36, %v2075_v33  ;;  %v2103_v41 = vsel %vm977_vm6, %v2075_v33, %v2077_v37 }
 0x90c   : > { %2157 = vmatprep.subr.mxu0 %v2103_v41 }
 0x90d   : > { %2158 = vmatpush1.msra.mxu0 %v2102_v38 }
 0x90e   : > { %2400 = vmatmul.mubr.msk.f32.vlgmr.msra.gmra.mxu0 %vm1180_vm4, %v2053_v43 }
 0x917   : > { %v2058_v47 = vpop.permute.xlu0 %2057  ;;  %v2205_v58 = vpop.permute.xlu1 %2204 }
 0x9ce   : > { %v2193_v46 = vpop.f32.mrf.mxu0 }
 0x9cf   : > { %v2194_v50 = vadd.f32 %v2193_v46, %v2058_v47 }
 0x9d0   : > { %v2195_v52 = vpop.f32.mrf.mxu0 }
 0x9d1   : > { %v2196_v53 = vadd.f32 %v2195_v52, %v2058_v47  ;;  %v2198_v30 = vmax.f32 %v2194_v50, 0.0 }
 0x9d3   : > { %v2199_v54 = vmax.f32 %v2196_v53, 0.0 }
 0x9d5   : > { %2401 = vmatprep.subr.msk.mxu1 %vm753_vm0, %v2199_v54 }
 0x9d6   : > { %2402 = vmatpush1.msk.msra.mxu1 %vm753_vm0, %v2198_v30 }
 0x9d7   : > { %2403 = vmatmul.mubr.msk.f32.vlgmr.msra.gmra.mxu1 %vm749_vm3, %v2200_v56 }
 0xa97   : > { %v2282_v59 = vpop.f32.mrf.mxu1 }
 0xa98   : > { %v2283_v62 = vadd.f32 %v2282_v59, %v2205_v58 }
 0xa99   : > { %v2284_v2 = vpop.f32.mrf.mxu1 }
 0xa9a   : > { %v2288_v3 = vmul.f32 %v2287_v61, %v2283_v62  ;;  %v2285_v16 = vadd.f32 %v2284_v2, %v2205_v58 }
 0xa9c   : > { %v2290_v17 = vadd.f32 %v2288_v3, %v3007_v1  ;;  %v2289_v13 = vmul.f32 %v2287_v61, %v2285_v16 }
 0xa9e   : > { %2292 = vst [vmem:[%s697_s25] sm:$0xff] %v2290_v17  ;;  %v2291_v5 = vadd.f32 %v2289_v13, %v3004_v63 }
 0xaa0   : > { %2293 = vst [vmem:[%s697_s25 + $0x8] sm:$0xff] %v2291_v5 }
 0xaa1 PF: > { %s33_s3 = sadd.s32 1, %s2482_s3  }
 0xaa2   : > { %p30_p1 = scmp.ge.s32.totalorder %s33_s3, 4  }
 0xaa4   :  { %32 = sbr.rel (!%p30_p1) target bundleno = 9 (0x9), region = 143 }
 0xaa9   :  { %2315 = vsyncpa [#allocation4], 1 }
 0xaaa   :  { %2317 = vsyncpa [#allocation4 + $0x1], 1 }

</bundles_post_ra>
